<compile_context>
chip_gen: v7x
topology: tpu7x:2x2x1
jax: 0.10.0
libtpu: 0.0.40
codegen_flags: <defaults>
</compile_context>

<pallas_src>
import functools
import math

import jax
import jax.numpy as jnp
from jax.experimental import pallas as pl
from jax.experimental.pallas import tpu as pltpu

LANGS = ['go', 'java', 'javascript', 'php', 'python', 'ruby']
N_DIM = 768
N_LANG = len(LANGS)

# TODO(synk): the wrapped pretrained encoder (RoBERTa / GraphCodeBERT) in the
# original Model.forward is an external transformer and is not reimplemented
# here; this kernel covers the language-attention fusion head + fusion Linear.


def _mlt_kernel(x_ref, w1_ref, w2_ref, b_ref, o_ref, *, idx, scale):
    # x_ref : [L, TB, D] bf16 (batch-tiled, pipelined)
    # w1/w2 : [D, D] bf16, whole-array VMEM-resident
    # b_ref : [1, D] f32   | o_ref: [TB, D]
    n_lang = x_ref.shape[0]
    lang_bf = x_ref[idx]                              # [TB, D] bf16, contiguous view
    lang = lang_bf.astype(jnp.float32)                # f32 for VPU score/softmax math
    tb = lang.shape[0]

    neg_min = jnp.finfo(jnp.float32).min
    x_f32 = [None] * n_lang
    cols = []
    for l in range(n_lang):
        if l == idx:
            # own-language slot masked with dtype min (matches torch.finfo.min)
            cols.append(jnp.full((tb, 1), neg_min, dtype=jnp.float32))
        else:
            xl = x_ref[l].astype(jnp.float32)         # [TB, D]; cast once, reused below
            x_f32[l] = xl
            cols.append(jnp.sum(lang * xl, axis=-1, keepdims=True) * scale)
    scores = jnp.concatenate(cols, axis=-1)           # [TB, L] f32

    # softmax over the L axis (f32); reciprocal goes to the (otherwise idle) EUP
    m = jnp.max(scores, axis=-1, keepdims=True)
    e = jnp.exp(scores - m)
    attn_w = e * pl.reciprocal(jnp.sum(e, axis=-1, keepdims=True), approx=True)

    # attended = sum_l w[:, l] * x[l]; the idx term is skipped because its softmax
    # weight is exactly 0 (exp(finfo.min - m) underflows), identical to the reference.
    attended = jnp.zeros_like(lang)
    for l in range(n_lang):
        if l == idx:
            continue
        attended = attended + attn_w[:, l:l + 1] * x_f32[l]

    # fusion Linear as two accumulating bf16 MXU matmuls (no [TB, 2D] concat slab)
    acc = jnp.dot(lang_bf, w1_ref[...], preferred_element_type=jnp.float32)
    acc = acc + jnp.dot(attended.astype(jnp.bfloat16), w2_ref[...],
                        preferred_element_type=jnp.float32)
    o_ref[...] = (acc + b_ref[...]).astype(o_ref.dtype)


def prepare_fusion_params(weight, bias):
    """One-time parameter prep OUTSIDE the hot path.

    weight: [D, 2D] (PyTorch nn.Linear layout), bias: [D].
    Returns (w_lang, w_att, bias_row): two [D, D] bf16 matrices pre-transposed for
    lane-dense matmuls, and the bias as a [1, D] f32 row.
    """
    D = bias.shape[0]
    w_lang = jnp.asarray(weight[:, :D].T, dtype=jnp.bfloat16)   # [D, D]
    w_att = jnp.asarray(weight[:, D:].T, dtype=jnp.bfloat16)    # [D, D]
    return w_lang, w_att, bias.reshape(1, D).astype(jnp.float32)


def prepare_inputs(inputs_bld):
    """One-time activation relayout OUTSIDE the hot path: [B, L, D] -> [L, B, D] bf16.

    Ideally the upstream encoder emits this layout/dtype directly so no extra HBM
    round trip is paid here; this helper exists for callers that have [B, L, D] f32.
    """
    return jnp.transpose(inputs_bld, (1, 0, 2)).astype(jnp.bfloat16)


def _chip_vmem_bytes():
    try:
        return pltpu.get_tpu_info().vmem_capacity_bytes
    except Exception:
        return 64 << 20   # conservative (v7x per-TC VMEM)


def _pick_batch_tile(B, vmem_bytes):
    """Generation-aware batch tile.

    v5e/v6e (128 MiB VMEM, 1 TC): go up to 1024 rows to amortize ~0.35us/step.
    v7x (64 MiB VMEM, 2 TCs): cap at 512 and keep >= 2 grid blocks so the
    'parallel' batch axis actually feeds both TensorCores.
    """
    if B < 8:
        return B                                  # single block == full batch dim
    big_vmem = vmem_bytes >= (100 << 20)
    cap = 1024 if big_vmem else 512
    if not big_vmem and B >= 256:
        cap = min(cap, 128 * pl.cdiv(pl.cdiv(B, 2), 128))   # >= 2 blocks on v7x
    return min(cap, 8 * (B // 8))                 # multiple of 8, <= B


def mlt_forward(x_lbd, w_lang, w_att, bias_row, lang, *, tile_b=None,
                out_dtype=jnp.float32):
    """x_lbd: [L, B, D] bf16 (see prepare_inputs); params from prepare_fusion_params.

    Set out_dtype=jnp.bfloat16 if the downstream consumer accepts bf16 (halves the
    output writeback traffic).
    """
    L, B, D = x_lbd.shape
    assert L == N_LANG and D == N_DIM
    idx = LANGS.index(lang)
    scale = 1.0 / math.sqrt(D)

    vmem_cap = _chip_vmem_bytes()
    tb = tile_b if tile_b is not None else _pick_batch_tile(B, vmem_cap)
    n_blocks = pl.cdiv(B, tb)                     # ragged tail handled by Pallas
    vmem_limit = (72 << 20) if vmem_cap >= (100 << 20) else (40 << 20)

    kernel = functools.partial(_mlt_kernel, idx=idx, scale=scale)
    return pl.pallas_call(
        kernel,
        out_shape=jax.ShapeDtypeStruct((B, D), out_dtype),
        grid=(n_blocks,),
        in_specs=[
            pl.BlockSpec((L, tb, D), lambda i: (0, i, 0)),            # pipelined x
            pl.BlockSpec(memory_space=pltpu.MemorySpace.VMEM),        # w_lang resident
            pl.BlockSpec(memory_space=pltpu.MemorySpace.VMEM),        # w_att resident
            pl.BlockSpec(memory_space=pltpu.MemorySpace.VMEM),        # bias resident
        ],
        out_specs=pl.BlockSpec((tb, D), lambda i: (i, 0)),
        compiler_params=pltpu.CompilerParams(
            dimension_semantics=("parallel",),    # v7x: shard batch across 2 TCs
            vmem_limit_bytes=vmem_limit,
        ),
    )(x_lbd, w_lang, w_att, bias_row)


def mlt_reference(inputs, weight, bias, lang):
    idx = LANGS.index(lang)
    D = inputs.shape[-1]
    lang_emb = inputs[:, idx, :][:, None, :]                       # [B,1,D]
    attn = jnp.einsum('bqd,bld->bql', lang_emb, inputs) / math.sqrt(D)
    attn = attn.at[:, :, idx].set(jnp.finfo(attn.dtype).min)
    w = jax.nn.softmax(attn, axis=-1)
    attended = jnp.einsum('bql,bld->bqd', w, inputs)
    cat = jnp.concatenate([lang_emb, attended], axis=-1)           # [B,1,2D]
    out = jnp.einsum('bqk,dk->bqd', cat, weight) + bias
    return out[:, 0, :]


if __name__ == "__main__":
    key = jax.random.PRNGKey(0)
    k_x, k_w, k_b = jax.random.split(key, 3)

    B = 4
    lang = 'python'

    x = jax.random.normal(k_x, (B, N_LANG, N_DIM), dtype=jnp.float32)
    # nn.Linear(2*768, 768): weight [768, 1536], bias [768] — deterministic synthetic init.
    bound = 1.0 / math.sqrt(2 * N_DIM)
    weight = jax.random.uniform(k_w, (N_DIM, 2 * N_DIM), jnp.float32, -bound, bound)
    bias = jax.random.uniform(k_b, (N_DIM,), jnp.float32, -bound, bound)

    # One-time prep outside the hot path (weight transpose/split/bf16, x relayout/bf16).
    w_lang, w_att, bias_row = prepare_fusion_params(weight, bias)
    x_lbd = prepare_inputs(x)

    out = mlt_forward(x_lbd, w_lang, w_att, bias_row, lang)
    out = jax.block_until_ready(out)

    ref = mlt_reference(x, weight, bias, lang)
    assert out.shape == (B, N_DIM)
    # bf16 activations + bf16 fusion weights on the MXU (f32 accumulate) => looser tol.
    max_err = float(jnp.max(jnp.abs(out - ref)))
    assert jnp.allclose(out, ref, atol=5e-2, rtol=5e-2), (
        f"mismatch vs JAX reference (max abs err {max_err})")

    print("KERNEL_OK")
</pallas_src>

<mosaic_0001>
module attributes {stable_mosaic.version = 11 : i64} {
  func.func @_mlt_kernel(%arg0: i32, %arg1: memref<6x4x768xbf16, #tpu.memory_space<vmem>>, %arg2: memref<768x768xbf16, #tpu.memory_space<vmem>>, %arg3: memref<768x768xbf16, #tpu.memory_space<vmem>>, %arg4: memref<1x768xf32, #tpu.memory_space<vmem>>, %arg5: memref<4x768xf32, #tpu.memory_space<vmem>>) attributes {dimension_semantics = [#tpu.dimension_semantics<parallel>], iteration_bounds = array<i64: 1>, scalar_prefetch = 0 : i64, scratch_operands = 0 : i64, tpu.core_type = #tpu.core_type<tc>, window_params = [{transform_indices = @transform_0, window_bounds = array<i64: 6, 4, 768>}, {pipeline_mode = #tpu.pipeline_mode<synchronous>, transform_indices = @transform_1, window_bounds = array<i64: 768, 768>}, {pipeline_mode = #tpu.pipeline_mode<synchronous>, transform_indices = @transform_2, window_bounds = array<i64: 768, 768>}, {pipeline_mode = #tpu.pipeline_mode<synchronous>, transform_indices = @transform_3, window_bounds = array<i64: 1, 768>}, {transform_indices = @transform_4, window_bounds = array<i64: 4, 768>}]} {
    %c4 = arith.constant 4 : index
    %c0 = arith.constant 0 : index
    %c0_0 = arith.constant 0 : index
    %0 = vector.load %arg1[%c4, %c0, %c0_0] : memref<6x4x768xbf16, #tpu.memory_space<vmem>>, vector<1x4x768xbf16>
    %1 = vector.shape_cast %0 : vector<1x4x768xbf16> to vector<4x768xbf16>
    %2 = arith.extf %1 : vector<4x768xbf16> to vector<4x768xf32>
    %c0_1 = arith.constant 0 : index
    %c0_2 = arith.constant 0 : index
    %c0_3 = arith.constant 0 : index
    %3 = vector.load %arg1[%c0_1, %c0_2, %c0_3] : memref<6x4x768xbf16, #tpu.memory_space<vmem>>, vector<1x4x768xbf16>
    %4 = vector.shape_cast %3 : vector<1x4x768xbf16> to vector<4x768xbf16>
    %5 = arith.extf %4 : vector<4x768xbf16> to vector<4x768xf32>
    %6 = arith.mulf %2, %5 : vector<4x768xf32>
    %cst = arith.constant dense<0.000000e+00> : vector<4xf32>
    %7 = vector.multi_reduction <add>, %6, %cst [1] : vector<4x768xf32> to vector<4xf32>
    %8 = vector.shape_cast %7 : vector<4xf32> to vector<4x1xf32>
    %cst_4 = arith.constant 0.0360843912 : f32
    %9 = vector.broadcast %cst_4 : f32 to vector<4x1xf32>
    %10 = arith.mulf %8, %9 : vector<4x1xf32>
    %c1 = arith.constant 1 : index
    %c0_5 = arith.constant 0 : index
    %c0_6 = arith.constant 0 : index
    %11 = vector.load %arg1[%c1, %c0_5, %c0_6] : memref<6x4x768xbf16, #tpu.memory_space<vmem>>, vector<1x4x768xbf16>
    %12 = vector.shape_cast %11 : vector<1x4x768xbf16> to vector<4x768xbf16>
    %13 = arith.extf %12 : vector<4x768xbf16> to vector<4x768xf32>
    %14 = arith.mulf %2, %13 : vector<4x768xf32>
    %cst_7 = arith.constant dense<0.000000e+00> : vector<4xf32>
    %15 = vector.multi_reduction <add>, %14, %cst_7 [1] : vector<4x768xf32> to vector<4xf32>
    %16 = vector.shape_cast %15 : vector<4xf32> to vector<4x1xf32>
    %cst_8 = arith.constant 0.0360843912 : f32
    %17 = vector.broadcast %cst_8 : f32 to vector<4x1xf32>
    %18 = arith.mulf %16, %17 : vector<4x1xf32>
    %c2 = arith.constant 2 : index
    %c0_9 = arith.constant 0 : index
    %c0_10 = arith.constant 0 : index
    %19 = vector.load %arg1[%c2, %c0_9, %c0_10] : memref<6x4x768xbf16, #tpu.memory_space<vmem>>, vector<1x4x768xbf16>
    %20 = vector.shape_cast %19 : vector<1x4x768xbf16> to vector<4x768xbf16>
    %21 = arith.extf %20 : vector<4x768xbf16> to vector<4x768xf32>
    %22 = arith.mulf %2, %21 : vector<4x768xf32>
    %cst_11 = arith.constant dense<0.000000e+00> : vector<4xf32>
    %23 = vector.multi_reduction <add>, %22, %cst_11 [1] : vector<4x768xf32> to vector<4xf32>
    %24 = vector.shape_cast %23 : vector<4xf32> to vector<4x1xf32>
    %cst_12 = arith.constant 0.0360843912 : f32
    %25 = vector.broadcast %cst_12 : f32 to vector<4x1xf32>
    %26 = arith.mulf %24, %25 : vector<4x1xf32>
    %c3 = arith.constant 3 : index
    %c0_13 = arith.constant 0 : index
    %c0_14 = arith.constant 0 : index
    %27 = vector.load %arg1[%c3, %c0_13, %c0_14] : memref<6x4x768xbf16, #tpu.memory_space<vmem>>, vector<1x4x768xbf16>
    %28 = vector.shape_cast %27 : vector<1x4x768xbf16> to vector<4x768xbf16>
    %29 = arith.extf %28 : vector<4x768xbf16> to vector<4x768xf32>
    %30 = arith.mulf %2, %29 : vector<4x768xf32>
    %cst_15 = arith.constant dense<0.000000e+00> : vector<4xf32>
    %31 = vector.multi_reduction <add>, %30, %cst_15 [1] : vector<4x768xf32> to vector<4xf32>
    %32 = vector.shape_cast %31 : vector<4xf32> to vector<4x1xf32>
    %cst_16 = arith.constant 0.0360843912 : f32
    %33 = vector.broadcast %cst_16 : f32 to vector<4x1xf32>
    %34 = arith.mulf %32, %33 : vector<4x1xf32>
    %cst_17 = arith.constant -3.40282347E+38 : f32
    %35 = vector.broadcast %cst_17 : f32 to vector<4x1xf32>
    %c5 = arith.constant 5 : index
    %c0_18 = arith.constant 0 : index
    %c0_19 = arith.constant 0 : index
    %36 = vector.load %arg1[%c5, %c0_18, %c0_19] : memref<6x4x768xbf16, #tpu.memory_space<vmem>>, vector<1x4x768xbf16>
    %37 = vector.shape_cast %36 : vector<1x4x768xbf16> to vector<4x768xbf16>
    %38 = arith.extf %37 : vector<4x768xbf16> to vector<4x768xf32>
    %39 = arith.mulf %2, %38 : vector<4x768xf32>
    %cst_20 = arith.constant dense<0.000000e+00> : vector<4xf32>
    %40 = vector.multi_reduction <add>, %39, %cst_20 [1] : vector<4x768xf32> to vector<4xf32>
    %41 = vector.shape_cast %40 : vector<4xf32> to vector<4x1xf32>
    %cst_21 = arith.constant 0.0360843912 : f32
    %42 = vector.broadcast %cst_21 : f32 to vector<4x1xf32>
    %43 = arith.mulf %41, %42 : vector<4x1xf32>
    %44 = tpu.concatenate %10, %18, %26, %34, %35, %43 in 1 : vector<4x1xf32>, vector<4x1xf32>, vector<4x1xf32>, vector<4x1xf32>, vector<4x1xf32>, vector<4x1xf32> -> vector<4x6xf32>
    %cst_22 = arith.constant dense<0xFF800000> : vector<4xf32>
    %45 = vector.multi_reduction <maximumf>, %44, %cst_22 [1] : vector<4x6xf32> to vector<4xf32>
    %46 = vector.shape_cast %45 : vector<4xf32> to vector<4x1xf32>
    %47 = vector.broadcast %46 : vector<4x1xf32> to vector<4x6xf32>
    %48 = arith.subf %44, %47 : vector<4x6xf32>
    %49 = math.exp %48 : vector<4x6xf32>
    %cst_23 = arith.constant dense<0.000000e+00> : vector<4xf32>
    %50 = vector.multi_reduction <add>, %49, %cst_23 [1] : vector<4x6xf32> to vector<4xf32>
    %51 = vector.shape_cast %50 : vector<4xf32> to vector<4x1xf32>
    %52 = tpu.reciprocal %51 {approx = true} : vector<4x1xf32> -> vector<4x1xf32>
    %53 = vector.broadcast %52 : vector<4x1xf32> to vector<4x6xf32>
    %54 = arith.mulf %49, %53 : vector<4x6xf32>
    %cst_24 = arith.constant 0.000000e+00 : f32
    %55 = vector.broadcast %cst_24 : f32 to vector<4x768xf32>
    %56 = vector.extract_strided_slice %54 {offsets = [0, 0], sizes = [4, 1], strides = [1, 1]} : vector<4x6xf32> to vector<4x1xf32>
    %57 = vector.broadcast %56 : vector<4x1xf32> to vector<4x768xf32>
    %58 = arith.mulf %57, %5 : vector<4x768xf32>
    %59 = arith.addf %55, %58 : vector<4x768xf32>
    %60 = vector.extract_strided_slice %54 {offsets = [0, 1], sizes = [4, 1], strides = [1, 1]} : vector<4x6xf32> to vector<4x1xf32>
    %61 = vector.broadcast %60 : vector<4x1xf32> to vector<4x768xf32>
    %62 = arith.mulf %61, %13 : vector<4x768xf32>
    %63 = arith.addf %59, %62 : vector<4x768xf32>
    %64 = vector.extract_strided_slice %54 {offsets = [0, 2], sizes = [4, 1], strides = [1, 1]} : vector<4x6xf32> to vector<4x1xf32>
    %65 = vector.broadcast %64 : vector<4x1xf32> to vector<4x768xf32>
    %66 = arith.mulf %65, %21 : vector<4x768xf32>
    %67 = arith.addf %63, %66 : vector<4x768xf32>
    %68 = vector.extract_strided_slice %54 {offsets = [0, 3], sizes = [4, 1], strides = [1, 1]} : vector<4x6xf32> to vector<4x1xf32>
    %69 = vector.broadcast %68 : vector<4x1xf32> to vector<4x768xf32>
    %70 = arith.mulf %69, %29 : vector<4x768xf32>
    %71 = arith.addf %67, %70 : vector<4x768xf32>
    %72 = vector.extract_strided_slice %54 {offsets = [0, 5], sizes = [4, 1], strides = [1, 1]} : vector<4x6xf32> to vector<4x1xf32>
    %73 = vector.broadcast %72 : vector<4x1xf32> to vector<4x768xf32>
    %74 = arith.mulf %73, %38 : vector<4x768xf32>
    %75 = arith.addf %71, %74 : vector<4x768xf32>
    %c0_25 = arith.constant 0 : index
    %c0_26 = arith.constant 0 : index
    %76 = vector.load %arg2[%c0_25, %c0_26] : memref<768x768xbf16, #tpu.memory_space<vmem>>, vector<768x768xbf16>
    %cst_27 = arith.constant dense<0.000000e+00> : vector<4x768xf32>
    %77 = tpu.matmul %1, %76, %cst_27 {dimension_numbers = #tpu.dot_dimension_numbers<[1], [0], [0], [1], [0, 0, 1, 1], [], []>} : vector<4x768xbf16>, vector<768x768xbf16>, vector<4x768xf32> -> vector<4x768xf32>
    %78 = arith.truncf %75 : vector<4x768xf32> to vector<4x768xbf16>
    %c0_28 = arith.constant 0 : index
    %c0_29 = arith.constant 0 : index
    %79 = vector.load %arg3[%c0_28, %c0_29] : memref<768x768xbf16, #tpu.memory_space<vmem>>, vector<768x768xbf16>
    %cst_30 = arith.constant dense<0.000000e+00> : vector<4x768xf32>
    %80 = tpu.matmul %78, %79, %cst_30 {dimension_numbers = #tpu.dot_dimension_numbers<[1], [0], [0], [1], [0, 0, 1, 1], [], []>} : vector<4x768xbf16>, vector<768x768xbf16>, vector<4x768xf32> -> vector<4x768xf32>
    %81 = arith.addf %77, %80 : vector<4x768xf32>
    %c0_31 = arith.constant 0 : index
    %c0_32 = arith.constant 0 : index
    %82 = vector.load %arg4[%c0_31, %c0_32] : memref<1x768xf32, #tpu.memory_space<vmem>>, vector<1x768xf32>
    %83 = vector.broadcast %82 : vector<1x768xf32> to vector<4x768xf32>
    %84 = arith.addf %81, %83 : vector<4x768xf32>
    %c0_33 = arith.constant 0 : index
    %c0_34 = arith.constant 0 : index
    %85 = vector.load %arg5[%c0_33, %c0_34] : memref<4x768xf32, #tpu.memory_space<vmem>>, vector<4x768xf32>
    tpu.vector_store %arg5[%c0_33, %c0_34], %84 {strides = array<i32>} : memref<4x768xf32, #tpu.memory_space<vmem>>, vector<4x768xf32>,
    return
  }
  func.func @transform_0(%arg0: i32) -> (i32, i32, i32) {
    %c0_i32 = arith.constant 0 : i32
    %c0_i32_0 = arith.constant 0 : i32
    %c0_i32_1 = arith.constant 0 : i32
    return %c0_i32, %arg0, %c0_i32_0 : i32, i32, i32
  }
  func.func @transform_1(%arg0: i32) -> (i32, i32) {
    %c0_i32 = arith.constant 0 : i32
    %c0_i32_0 = arith.constant 0 : i32
    %c0_i32_1 = arith.constant 0 : i32
    return %c0_i32, %c0_i32_0 : i32, i32
  }
  func.func @transform_2(%arg0: i32) -> (i32, i32) {
    %c0_i32 = arith.constant 0 : i32
    %c0_i32_0 = arith.constant 0 : i32
    %c0_i32_1 = arith.constant 0 : i32
    return %c0_i32, %c0_i32_0 : i32, i32
  }
  func.func @transform_3(%arg0: i32) -> (i32, i32) {
    %c0_i32 = arith.constant 0 : i32
    %c0_i32_0 = arith.constant 0 : i32
    %c0_i32_1 = arith.constant 0 : i32
    return %c0_i32, %c0_i32_0 : i32, i32
  }
  func.func @transform_4(%arg0: i32) -> (i32, i32) {
    %c0_i32 = arith.constant 0 : i32
    %c0_i32_0 = arith.constant 0 : i32
    return %arg0, %c0_i32 : i32, i32
  }
}

</mosaic_0001>

<bundles_post_ra>
// kernel: tpu_custom_call.1
= control target key start
LH: loop header
LB: loop body
LE: loop exit
PB: predicated region body
PF: predicated region fallthrough
CT: control target
= control target key end

     0   :  { %9 = vsyncpa [#allocation3], 0  ;;  %s6656_s0 = inlined_call_operand.hbm [shape: bf16[6,4,768], index: 0, kind: input, shape index: {}]   ;;  %s6657_s1 = inlined_call_operand.hbm [shape: bf16[768,768], index: 1, kind: input, shape index: {}]   ;;  %s6658_s2 = inlined_call_operand.hbm [shape: bf16[768,768], index: 2, kind: input, shape index: {}]   ;;  %s6659_s3 = inlined_call_operand.hbm [shape: f32[1,768], index: 3, kind: input, shape index: {}]   ;;  %s6660_s4 = inlined_call_operand.hbm [shape: f32[4,768], index: 4, kind: output, shape index: {}]  }
   0x1   :  { %10 = vsyncpa [#allocation6], 0 }
   0x2   :  { %11 = vsyncpa [#allocation9], 0 }
   0x3   :  { %12 = vsyncpa [#allocation4], 0  ;;  %s6275_s15 = smov [#allocation5]   ;;  %s6157_s19 = scalar_lea.hbm %s6657_s1, 36864 }
   0x4   :  { %s30_s16 = sshll.u32 %s6275_s15, 4  ;;  %p6158_p0 = scmp.ne.s32.totalorder %s6657_s1, %s6157_s19  ;;  %s31_s16 = int_to_ptr.vmem [resolvable:$true] %s30_s16 }
   0x5   :  { %p6161_p1 = scmp.lt.u32.totalorder %s6157_s19, %s6657_s1 }
   0x7   :  { %p6163_p2 = pnand %p6161_p1, %p6158_p0 }
   0x9   :  { %6166 = shalt.err (!%p6163_p2)
}
   0xa   :  { %s6167_s24 = scalar_lea.vmem %s31_s16, 36864  ;;  %p6172_p4 = scmp.lt.s32.totalorder %s31_s16, %s31_s16 }
   0xb   :  { %p6168_p3 = scmp.ne.s32.totalorder %s31_s16, %s6167_s24  ;;  %p6173_p5 = scmp.lt.s32.totalorder %s6167_s24, %s6167_s24 }
   0xd   :  { %p6174_p6 = por %p6173_p5, %p6172_p4 }
   0xf   :  { %p6175_p7 = pnand %p6174_p6, %p6168_p3 }
  0x11   :  { %6178 = shalt.err (!%p6175_p7)
}
  0x12   :  { %s6276_s25 = smov 384   ;;  %s6277_s26 = smov 24  }
  0x13   :  { %36 = dma.hbm_to_vmem [thread:$0]  %s6657_s1, 36864, %s31_s16, [#allocation6], %s6276_s25, %s6276_s25, %s6277_s26  }
  0x14   :  { %s6278_s29 = smov [#allocation2]   ;;  %s6179_s7 = scalar_lea.hbm %s6656_s0, 1152 }
  0x15   :  { %s18_s30 = sshll.u32 %s6278_s29, 4  ;;  %p6180_p8 = scmp.ne.s32.totalorder %s6656_s0, %s6179_s7  ;;  %s19_s30 = int_to_ptr.vmem [resolvable:$true] %s18_s30 }
  0x16   :  { %p6183_p9 = scmp.lt.u32.totalorder %s6179_s7, %s6656_s0 }
  0x18   :  { %p6185_p10 = pnand %p6183_p9, %p6180_p8 }
  0x1a   :  { %6188 = shalt.err (!%p6185_p10)
}
  0x1b   :  { %s6189_s12 = scalar_lea.vmem %s19_s30, 1152  ;;  %p6194_p12 = scmp.lt.s32.totalorder %s19_s30, %s19_s30 }
  0x1c   :  { %p6190_p11 = scmp.ne.s32.totalorder %s19_s30, %s6189_s12  ;;  %p6195_p13 = scmp.lt.s32.totalorder %s6189_s12, %s6189_s12 }
  0x1e   :  { %p6196_p0 = por %p6195_p13, %p6194_p12 }
  0x20   :  { %p6197_p1 = pnand %p6196_p0, %p6190_p11 }
  0x22   :  { %6200 = shalt.err (!%p6197_p1)
}
  0x23   :  { %s6279_s1 = smov 192   ;;  %s6280_s13 = smov 12  }
  0x24   :  { %24 = dma.hbm_to_vmem [thread:$0]  %s6656_s0, 1152, %s19_s30, [#allocation3], %s6279_s1, %s6279_s1, %s6280_s13  }
  0x25   :  { %s6281_s16 = smov [#allocation7]   ;;  %s6282_s18 = smov [#allocation8]  }
  0x26   :  { %s42_s17 = sshll.u32 %s6281_s16, 4  ;;  %s55_s19 = sshll.u32 %s6282_s18, 4  ;;  %s43_s17 = int_to_ptr.vmem [resolvable:$true] %s42_s17  ;;  %s56_s19 = int_to_ptr.vmem [resolvable:$true] %s55_s19 }
  0x27   :  { %s6201_s22 = scalar_lea.hbm %s6658_s2, 36864 }
  0x28   :  { %p6202_p2 = scmp.ne.s32.totalorder %s6658_s2, %s6201_s22  ;;  %p6205_p3 = scmp.lt.u32.totalorder %s6201_s22, %s6658_s2 }
  0x2a   :  { %p6207_p4 = pnand %p6205_p3, %p6202_p2 }
  0x2c   :  { %6210 = shalt.err (!%p6207_p4)
}
  0x2d   :  { %s6211_s0 = scalar_lea.vmem %s43_s17, 36864  ;;  %p6216_p6 = scmp.lt.s32.totalorder %s43_s17, %s43_s17 }
  0x2e   :  { %p6212_p5 = scmp.ne.s32.totalorder %s43_s17, %s6211_s0  ;;  %p6217_p7 = scmp.lt.s32.totalorder %s6211_s0, %s6211_s0 }
  0x30   :  { %p6218_p8 = por %p6217_p7, %p6216_p6 }
  0x32   :  { %p6219_p9 = pnand %p6218_p8, %p6212_p5 }
  0x34   :  { %6222 = shalt.err (!%p6219_p9)
}
  0x35   :  { %48 = dma.hbm_to_vmem [thread:$0]  %s6658_s2, 36864, %s43_s17, [#allocation6], %s6276_s25, %s6276_s25, %s6277_s26  }
  0x36   :  { %s6223_s7 = scalar_lea.hbm %s6659_s3, 96 }
  0x37   :  { %p6224_p10 = scmp.ne.s32.totalorder %s6659_s3, %s6223_s7  ;;  %p6227_p11 = scmp.lt.u32.totalorder %s6223_s7, %s6659_s3 }
  0x39   :  { %p6229_p12 = pnand %p6227_p11, %p6224_p10 }
  0x3b   :  { %6232 = shalt.err (!%p6229_p12)
}
  0x3c   :  { %s6233_s12 = scalar_lea.vmem %s56_s19, 96  ;;  %p6238_p0 = scmp.lt.s32.totalorder %s56_s19, %s56_s19 }
  0x3d   :  { %p6234_p13 = scmp.ne.s32.totalorder %s56_s19, %s6233_s12  ;;  %p6239_p1 = scmp.lt.s32.totalorder %s6233_s12, %s6233_s12 }
  0x3f   :  { %p6240_p2 = por %p6239_p1, %p6238_p0 }
  0x41   :  { %p6241_p3 = pnand %p6240_p2, %p6234_p13 }
  0x43   :  { %6244 = shalt.err (!%p6241_p3)
}
  0x44   :  { %58 = dma.hbm_to_vmem [thread:$0]  %s6659_s3, 96, %s56_s19, [#allocation9]  }
  0x45   :  { %6267 = dma.done.wait [#allocation3], 1152  }
  0x46   :  { %6268 = vsyncadd [#allocation3], 4294966144 }
  0x47   :  { %6269 = dma.done.wait [#allocation6], 73728  }
  0x48   :  { %6270 = vsyncadd [#allocation6], 4294893568 }
  0x49   :  { %6271 = dma.done.wait [#allocation9], 96  }
  0x4a   :  { %6272 = vsyncadd [#allocation9], 4294967200  ;;  %v72_v0 = vld [vmem:[#allocation2 + $0x30] sm:$0xff]  ;;  %v73_v1 = vld [vmem:[#allocation2 + $0x38] sm:$0xf]  ;;  %vm94_vm0 = vcmask 1043456  }
  0x4b   :  { %v77_v2 = vld [vmem:[#allocation2] sm:$0xff]  ;;  %v6369_v3 = vunpack.c.l.bf16 %v72_v0  ;;  %v6371_v4 = vunpack.c.h.bf16 %v72_v0  ;;  %v6373_v5 = vunpack.c.l.bf16 %v73_v1  ;;  %v142_v8 = vld [vmem:[#allocation2 + $0x18] sm:$0xff]  ;;  %v110_v13 = vld [vmem:[#allocation2 + $0xc] sm:$0xff]  ;;  %vm237_vm1 = vcmask 7168   ;;  %s6289_s3 = smov [#allocation10]  }
  0x4c   :  { %v78_v6 = vld [vmem:[#allocation2 + $0x8] ss:$24 sps:$4 sm:$0xff]   ;;  %v6375_v7 = vunpack.c.l.bf16 %v77_v2  ;;  %v6377_v9 = vunpack.c.h.bf16 %v77_v2  ;;  %v6381_v11 = vunpack.c.l.bf16 %v142_v8  ;;  %v6383_v12 = vunpack.c.h.bf16 %v142_v8  ;;  %v111_v16 = vld [vmem:[#allocation2 + $0x14] ss:$24 sps:$4 sm:$0xff]   ;;  %s4677_s26 = sshll.u32 %s6289_s3, 4  ;;  %s4678_s26 = int_to_ptr.vmem [resolvable:$true] %s4677_s26 }
  0x4d   :  { %v6379_v10 = vunpack.c.l.bf16 %v78_v6  ;;  %v6387_v15 = vunpack.c.h.bf16 %v78_v6  ;;  %v6400_v24 = vunpack.c.l.bf16 %v110_v13  ;;  %v6402_v27 = vunpack.c.h.bf16 %v110_v13  ;;  %v174_v29 = vld [vmem:[#allocation2 + $0x24] sm:$0xff]  ;;  %v206_v54 = vld [vmem:[#allocation2 + $0x3c] sm:$0xff]  ;;  %s6245_s1 = scalar_lea.vmem %s4678_s26, 384  ;;  %p6250_p5 = scmp.lt.s32.totalorder %s4678_s26, %s4678_s26 }
  0x4e   :  { %v82_v14 = vmul.f32 %v6375_v7, %v6369_v3  ;;  %v83_v17 = vmul.f32 %v6377_v9, %v6371_v4  ;;  %v147_v19 = vmul.f32 %v6381_v11, %v6369_v3  ;;  %v148_v20 = vmul.f32 %v6383_v12, %v6371_v4  ;;  %v207_v6 = vld [vmem:[#allocation2 + $0x44] sm:$0xf]  ;;  %p6246_p4 = scmp.ne.s32.totalorder %s4678_s26, %s6245_s1  ;;  %p6251_p6 = scmp.lt.s32.totalorder %s6245_s1, %s6245_s1 }
  0x4f   :  { %v84_v18 = vmul.f32 %v6379_v10, %v6373_v5  ;;  %v149_v23 = vmul.f32 %v6387_v15, %v6373_v5  ;;  %v6404_v28 = vunpack.c.l.bf16 %v111_v16  ;;  %v115_v45 = vmul.f32 %v6400_v24, %v6369_v3 }
  0x50   :  { %v88_v21 = vcombine.high %v82_v14, %v82_v14  ;;  %v95_v22 = vsel %vm94_vm0, %v82_v14, 0.0  ;;  %v89_v25 = vcombine.high %v83_v17, %v83_v17  ;;  %v98_v31 = vsel %vm94_vm0, %v83_v17, 0.0  ;;  %p6252_p7 = por %p6251_p6, %p6250_p5 }
  0x51   :  { %v90_v26 = vcombine.high %v84_v18, %v84_v18  ;;  %v153_v32 = vcombine.high %v147_v19, %v147_v19  ;;  %v154_v33 = vcombine.high %v148_v20, %v148_v20  ;;  %v102_v35 = vsel %vm94_vm0, %v84_v18, 0.0 }
  0x52   :  { %v96_v30 = vsel %vm94_vm0, %v88_v21, 0.0  ;;  %v155_v36 = vcombine.high %v149_v23, %v149_v23  ;;  %v159_v37 = vsel %vm94_vm0, %v147_v19, 0.0  ;;  %v100_v38 = vsel %vm94_vm0, %v89_v25, 0.0  ;;  %p6253_p8 = pnand %p6252_p7, %p6246_p4 }
  0x53   :  { %v97_v34 = vadd.f32 %v96_v30, %v95_v22  ;;  %v104_v39 = vsel %vm94_vm0, %v90_v26, 0.0  ;;  %v160_v40 = vsel %vm94_vm0, %v153_v32, 0.0  ;;  %v162_v41 = vsel %vm94_vm0, %v148_v20, 0.0 }
  0x54   :  { %v161_v43 = vadd.f32 %v160_v40, %v159_v37  ;;  %v164_v44 = vsel %vm94_vm0, %v154_v33, 0.0  ;;  %v116_v46 = vmul.f32 %v6402_v27, %v6371_v4  ;;  %v117_v47 = vmul.f32 %v6404_v28, %v6373_v5 }
  0x55   :  { %v99_v42 = vadd.f32 %v98_v31, %v97_v34  ;;  %v6421_v48 = vunpack.c.l.bf16 %v174_v29  ;;  %v6423_v49 = vunpack.c.h.bf16 %v174_v29  ;;  %v121_v52 = vcombine.high %v115_v45, %v115_v45 }
  0x56   :  { %v163_v51 = vadd.f32 %v162_v41, %v161_v43  ;;  %v127_v53 = vsel %vm94_vm0, %v115_v45, 0.0  ;;  %v166_v55 = vsel %vm94_vm0, %v149_v23, 0.0  ;;  %v168_v56 = vsel %vm94_vm0, %v155_v36, 0.0 }
  0x57   :  { %v101_v50 = vadd.f32 %v100_v38, %v99_v42  ;;  %v122_v57 = vcombine.high %v116_v46, %v116_v46  ;;  %v130_v58 = vsel %vm94_vm0, %v116_v46, 0.0  ;;  %v128_v61 = vsel %vm94_vm0, %v121_v52, 0.0 }
  0x58   :  { %v165_v60 = vadd.f32 %v164_v44, %v163_v51  ;;  %v6430_v62 = vunpack.c.h.bf16 %v111_v16  ;;  %v123_v63 = vcombine.high %v117_v47, %v117_v47  ;;  %v129_v0 = vadd.f32 %v128_v61, %v127_v53 }
  0x59   :  { %v103_v59 = vadd.f32 %v102_v35, %v101_v50  ;;  %v132_v1 = vsel %vm94_vm0, %v122_v57, 0.0  ;;  %v179_v2 = vmul.f32 %v6421_v48, %v6369_v3  ;;  %v180_v14 = vmul.f32 %v6423_v49, %v6371_v4 }
  0x5a   :  { %v167_v13 = vadd.f32 %v166_v55, %v165_v60  ;;  %v181_v17 = vmul.f32 %v6430_v62, %v6373_v5  ;;  %v131_v18 = vadd.f32 %v130_v58, %v129_v0  ;;  %v6440_v20 = vunpack.c.l.bf16 %v206_v54 }
  0x5b   :  { %v105_v8 = vadd.f32 %v104_v39, %v103_v59  ;;  %v185_v19 = vcombine.high %v179_v2, %v179_v2  ;;  %v191_v16 = vsel %vm94_vm0, %v179_v2, 0.0  ;;  %v134_v22 = vsel %vm94_vm0, %v117_v47, 0.0 }
  0x5c   :  { %v169_v21 = vadd.f32 %v168_v56, %v167_v13  ;;  %v186_v23 = vcombine.high %v180_v14, %v180_v14  ;;  %v133_v25 = vadd.f32 %v132_v1, %v131_v18  ;;  %v194_v29 = vsel %vm94_vm0, %v180_v14, 0.0 }
  0x5d   :  { %106 = vadd.xlane.f32.xlu0 %v105_v8  ;;  %v192_v26 = vsel %vm94_vm0, %v185_v19, 0.0  ;;  %v6445_v30 = vunpack.c.h.bf16 %v206_v54  ;;  %v136_v31 = vsel %vm94_vm0, %v123_v63, 0.0  ;;  %v187_v32 = vcombine.high %v181_v17, %v181_v17 }
  0x5e   :  { %170 = vadd.xlane.f32.xlu1 %v169_v21  ;;  %v193_v33 = vadd.f32 %v192_v26, %v191_v16  ;;  %v6448_v34 = vunpack.c.l.bf16 %v207_v6  ;;  %v135_v35 = vadd.f32 %v134_v22, %v133_v25  ;;  %v196_v36 = vsel %vm94_vm0, %v186_v23, 0.0 }
  0x5f   :  { %v211_v37 = vmul.f32 %v6440_v20, %v6369_v3  ;;  %v212_v38 = vmul.f32 %v6445_v30, %v6371_v4  ;;  %v198_v40 = vsel %vm94_vm0, %v181_v17, 0.0  ;;  %v200_v47 = vsel %vm94_vm0, %v187_v32, 0.0 }
  0x60   :  { %v195_v39 = vadd.f32 %v194_v29, %v193_v33  ;;  %v213_v41 = vmul.f32 %v6448_v34, %v6373_v5  ;;  %v137_v42 = vadd.f32 %v136_v31, %v135_v35  ;;  %vm239_vm2 = vcmask 15360   ;;  %v5285_v35 = vld [vmem:[#allocation7 + $0x4] ss:$24 sps:$4 sm:$0xff]  }
  0x61   :  { %v217_v43 = vcombine.high %v211_v37, %v211_v37  ;;  %v218_v44 = vcombine.high %v212_v38, %v212_v38  ;;  %v223_v45 = vsel %vm94_vm0, %v211_v37, 0.0  ;;  %v226_v50 = vsel %vm94_vm0, %v212_v38, 0.0  ;;  %v5289_v37 = vld [vmem:[#allocation7] ss:$24 sps:$4 sm:$0xff]   ;;  %2407 = vmatprep.subr.bf16.mxu0 %v5285_v35  ;;  %v5353_v35 = vld [vmem:[#allocation7 + $0x514] ss:$24 sps:$4 sm:$0xff]  }
  0x62   :  { %v197_v46 = vadd.f32 %v196_v36, %v195_v39  ;;  %138 = vadd.xlane.f32.xlu0 %v137_v42  ;;  %v219_v52 = vcombine.high %v213_v41, %v213_v41  ;;  %v230_v55 = vsel %vm94_vm0, %v213_v41, 0.0  ;;  %vm241_vm3 = vcmask 23552   ;;  %v5287_v36 = vld [vmem:[#allocation7 + $0x304] ss:$24 sps:$4 sm:$0xff]   ;;  %v5290_v38 = vld [vmem:[#allocation7 + $0x300] ss:$24 sps:$4 sm:$0xff]   ;;  %2408 = vmatpush1.bf16.msra.mxu0 %v5289_v37 }
  0x63   :  { %v224_v3 = vsel %vm94_vm0, %v217_v43, 0.0  ;;  %v228_v53 = vsel %vm94_vm0, %v218_v44, 0.0  ;;  %vm243_vm4 = vcmask 31744   ;;  %vm245_vm5 = vcmask 39936   ;;  %v5291_v39 = vld [vmem:[#allocation7 + $0x34] ss:$24 sps:$4 sm:$0xff]   ;;  %2448 = vmatprep.subr.bf16.mxu1 %v5287_v36 }
  0x64   :  { %v199_v4 = vadd.f32 %v198_v40, %v197_v46  ;;  %v225_v51 = vadd.f32 %v224_v3, %v223_v45  ;;  %v232_v57 = vsel %vm94_vm0, %v219_v52, 0.0  ;;  %vm247_vm6 = vcmask 44032   ;;  %v5293_v40 = vld [vmem:[#allocation7 + $0x334] ss:$24 sps:$4 sm:$0xff]   ;;  %2449 = vmatpush1.bf16.msra.mxu1 %v5290_v38  ;;  %v5295_v41 = vld [vmem:[#allocation7 + $0x30] ss:$24 sps:$4 sm:$0xff]   ;;  %2409 = vmatprep.subr.bf16.mxu0 %v5291_v39 }
  0x65   :  { %v6283_v32 = vmov 1   ;;  %v6284_v33 = vmov 0   ;;  %v5296_v42 = vld [vmem:[#allocation7 + $0x330] ss:$24 sps:$4 sm:$0xff]   ;;  %2450 = vmatprep.subr.bf16.mxu1 %v5293_v40  ;;  %v5297_v43 = vld [vmem:[#allocation7 + $0x64] ss:$24 sps:$4 sm:$0xff]  }
  0x66   :  { %v201_v54 = vadd.f32 %v200_v47, %v199_v4  ;;  %v227_v5 = vadd.f32 %v226_v50, %v225_v51  ;;  %5280 = vset.pattern.permute.xlu0 %v6283_v32  ;;  %5279 = vset.pattern.permute.xlu1 %v6284_v33  ;;  %v5299_v44 = vld [vmem:[#allocation7 + $0x364] ss:$24 sps:$4 sm:$0xff]   ;;  %v5301_v45 = vld [vmem:[#allocation7 + $0x60] ss:$24 sps:$4 sm:$0xff]   ;;  %v5303_v47 = vld [vmem:[#allocation7 + $0x94] ss:$24 sps:$4 sm:$0xff]  }
  0x67   :  { %2410 = vmatpush1.bf16.msra.mxu0 %v5295_v41  ;;  %v5302_v46 = vld [vmem:[#allocation7 + $0x360] ss:$24 sps:$4 sm:$0xff]   ;;  %v5305_v3 = vld [vmem:[#allocation7 + $0x394] ss:$24 sps:$4 sm:$0xff]   ;;  %v5307_v50 = vld [vmem:[#allocation7 + $0x90] ss:$24 sps:$4 sm:$0xff]  }
  0x68   :  { %202 = vadd.xlane.f32.xlu1 %v201_v54  ;;  %v229_v56 = vadd.f32 %v228_v53, %v227_v5  ;;  %2451 = vmatpush1.bf16.msra.mxu1 %v5296_v42  ;;  %v5308_v4 = vld [vmem:[#allocation7 + $0x390] ss:$24 sps:$4 sm:$0xff]   ;;  %v5309_v51 = vld [vmem:[#allocation7 + $0xc4] ss:$24 sps:$4 sm:$0xff]   ;;  %v5313_v53 = vld [vmem:[#allocation7 + $0xc0] ss:$24 sps:$4 sm:$0xff]  }
  0x69   :  { %2411 = vmatprep.subr.bf16.mxu0 %v5297_v43  ;;  %2452 = vmatprep.subr.bf16.mxu1 %v5299_v44  ;;  %v5311_v52 = vld [vmem:[#allocation7 + $0x3c4] ss:$24 sps:$4 sm:$0xff]   ;;  %v5314_v54 = vld [vmem:[#allocation7 + $0x3c0] ss:$24 sps:$4 sm:$0xff]   ;;  %v5315_v5 = vld [vmem:[#allocation7 + $0xf4] ss:$24 sps:$4 sm:$0xff]  }
  0x6a   :  { %v231_v58 = vadd.f32 %v230_v55, %v229_v56  ;;  %v5317_v55 = vld [vmem:[#allocation7 + $0x3f4] ss:$24 sps:$4 sm:$0xff]   ;;  %v5319_v56 = vld [vmem:[#allocation7 + $0xf0] ss:$24 sps:$4 sm:$0xff]   ;;  %v6285_v38 = vmov 2   ;;  %v6286_v44 = vmov 5  }
  0x6b   :  { %2412 = vmatpush1.bf16.msra.mxu0 %v5301_v45  ;;  %v5351_v33 = vld [vmem:[#allocation7 + $0x214] ss:$24 sps:$4 sm:$0xff]   ;;  %v5355_v36 = vld [vmem:[#allocation7 + $0x210] ss:$24 sps:$4 sm:$0xff]   ;;  %v5357_v39 = vld [vmem:[#allocation7 + $0x244] ss:$24 sps:$4 sm:$0xff]  }
  0x6c   :  { %v233_v59 = vadd.f32 %v232_v57, %v231_v58  ;;  %2453 = vmatpush1.bf16.msra.mxu1 %v5302_v46  ;;  %2413 = vmatprep.subr.bf16.mxu0 %v5303_v47  ;;  %v5320_v57 = vld [vmem:[#allocation7 + $0x3f0] ss:$24 sps:$4 sm:$0xff]   ;;  %v5321_v58 = vld [vmem:[#allocation7 + $0x124] ss:$24 sps:$4 sm:$0xff]   ;;  %v5361_v41 = vld [vmem:[#allocation7 + $0x240] ss:$24 sps:$4 sm:$0xff]  }
  0x6d   :  { %2454 = vmatprep.subr.bf16.mxu1 %v5305_v3  ;;  %v5356_v37 = vld [vmem:[#allocation7 + $0x510] ss:$24 sps:$4 sm:$0xff]   ;;  %v5359_v40 = vld [vmem:[#allocation7 + $0x544] ss:$24 sps:$4 sm:$0xff]   ;;  %v5362_v42 = vld [vmem:[#allocation7 + $0x540] ss:$24 sps:$4 sm:$0xff]  }
  0x6e   :  { %234 = vadd.xlane.f32.xlu0 %v233_v59  ;;  %v5323_v59 = vld [vmem:[#allocation7 + $0x424] ss:$24 sps:$4 sm:$0xff]   ;;  %v5363_v43 = vld [vmem:[#allocation7 + $0x274] ss:$24 sps:$4 sm:$0xff]   ;;  %v6287_v45 = vmov 3  }
  0x6f   :  { %2414 = vmatpush1.bf16.msra.mxu0 %v5307_v50  ;;  %v5367_v46 = vld [vmem:[#allocation7 + $0x270] ss:$24 sps:$4 sm:$0xff]   ;;  %v5369_v3 = vld [vmem:[#allocation7 + $0x2a4] ss:$24 sps:$4 sm:$0xff]  }
  0x70   :  { %2455 = vmatpush1.bf16.msra.mxu1 %v5308_v4  ;;  %2415 = vmatprep.subr.bf16.mxu0 %v5309_v51  ;;  %v5368_v47 = vld [vmem:[#allocation7 + $0x570] ss:$24 sps:$4 sm:$0xff]   ;;  %v5371_v50 = vld [vmem:[#allocation7 + $0x5a4] ss:$24 sps:$4 sm:$0xff]   ;;  %v5373_v4 = vld [vmem:[#allocation7 + $0x2a0] ss:$24 sps:$4 sm:$0xff]  }
  0x71   :  { %2456 = vmatprep.subr.bf16.mxu1 %v5311_v52  ;;  %v5374_v51 = vld [vmem:[#allocation7 + $0x5a0] ss:$24 sps:$4 sm:$0xff]   ;;  %v5375_v52 = vld [vmem:[#allocation7 + $0x2d4] ss:$24 sps:$4 sm:$0xff]  }
  0x73   :  { %2416 = vmatpush1.bf16.msra.mxu0 %v5313_v53  ;;  %v5377_v53 = vld [vmem:[#allocation7 + $0x5d4] ss:$24 sps:$4 sm:$0xff]  }
  0x74   :  { %2457 = vmatpush1.bf16.msra.mxu1 %v5314_v54  ;;  %2417 = vmatprep.subr.bf16.mxu0 %v5315_v5  ;;  %v5379_v54 = vld [vmem:[#allocation7 + $0x2d0] ss:$24 sps:$4 sm:$0xff]  }
  0x75   :  { %2458 = vmatprep.subr.bf16.mxu1 %v5317_v55  ;;  %v5380_v5 = vld [vmem:[#allocation7 + $0x5d0] ss:$24 sps:$4 sm:$0xff]   ;;  %v5383_v55 = vld [vmem:[#allocation7 + $0x604] ss:$24 sps:$4 sm:$0xff]  }
  0x77   :  { %2418 = vmatpush1.bf16.msra.mxu0 %v5319_v56  ;;  %v5386_v56 = vld [vmem:[#allocation7 + $0xc] ss:$24 sps:$4 sm:$0xff]  }
  0x78   :  { %2459 = vmatpush1.bf16.msra.mxu1 %v5320_v57  ;;  %2419 = vmatprep.subr.bf16.mxu0 %v5321_v58 }
  0x79   :  { %2460 = vmatprep.subr.bf16.mxu1 %v5323_v59  ;;  %v292_v59 = vcombine.high %v6400_v24, %v6400_v24 }
  0xea   :  { %v107_v60 = vpop.xlane.xlu0 %106 }
  0xeb   :  { %v171_v61 = vpop.xlane.xlu1 %170  ;;  %v108_v63 = vmul.f32 0.03608439, %v107_v60  ;;  %v5325_v60 = vld [vmem:[#allocation7 + $0x120] ss:$24 sps:$4 sm:$0xff]  }
  0xec   :  { %v172_v2 = vmul.f32 0.03608439, %v171_v61  ;;  %v5326_v61 = vld [vmem:[#allocation7 + $0x420] ss:$24 sps:$4 sm:$0xff]   ;;  %2420 = vmatpush1.bf16.msra.mxu0 %v5325_v60  ;;  %v267_v60 = vcombine.high %v6375_v7, %v6375_v7 }
  0xed   :  { %2461 = vmatpush1.bf16.msra.mxu1 %v5326_v61  ;;  %v293_v61 = vcombine.high %v6402_v27, %v6402_v27 }
  0xef   :  { %v139_v0 = vpop.xlane.xlu0 %138 }
  0xf0   :  { %v140_v1 = vmul.f32 0.03608439, %v139_v0  ;;  %v5329_v0 = vld [vmem:[#allocation7 + $0x454] ss:$24 sps:$4 sm:$0xff]  }
  0xf1   :  { %2462 = vmatprep.subr.bf16.mxu1 %v5329_v0 }
  0xf2   :  { %v238_v6 = vsel %vm237_vm1, %v108_v63, %v140_v1  ;;  %v5327_v63 = vld [vmem:[#allocation7 + $0x154] ss:$24 sps:$4 sm:$0xff]   ;;  %v5331_v1 = vld [vmem:[#allocation7 + $0x150] ss:$24 sps:$4 sm:$0xff]  }
  0xf3   :  { %v240_v13 = vsel %vm239_vm2, %v238_v6, %v172_v2  ;;  %v5332_v2 = vld [vmem:[#allocation7 + $0x450] ss:$24 sps:$4 sm:$0xff]   ;;  %2421 = vmatprep.subr.bf16.mxu0 %v5327_v63  ;;  %v5333_v6 = vld [vmem:[#allocation7 + $0x184] ss:$24 sps:$4 sm:$0xff]   ;;  %v294_v63 = vcombine.high %v6404_v28, %v6404_v28 }
  0xf4   :  { %2422 = vmatpush1.bf16.msra.mxu0 %v5331_v1  ;;  %2463 = vmatpush1.bf16.msra.mxu1 %v5332_v2  ;;  %v268_v1 = vcombine.high %v6377_v9, %v6377_v9  ;;  %v269_v2 = vcombine.high %v6379_v10, %v6379_v10 }
  0xf5   :  { %v203_v8 = vpop.xlane.xlu1 %202  ;;  %2423 = vmatprep.subr.bf16.mxu0 %v5333_v6 }
  0xf6   :  { %v204_v14 = vmul.f32 0.03608439, %v203_v8  ;;  %v5335_v8 = vld [vmem:[#allocation7 + $0x484] ss:$24 sps:$4 sm:$0xff]  }
  0xf7   :  { %2464 = vmatprep.subr.bf16.mxu1 %v5335_v8  ;;  %v317_v8 = vcombine.high %v6381_v11, %v6381_v11 }
  0xf8   :  { %v242_v17 = vsel %vm241_vm3, %v240_v13, %v204_v14  ;;  %v5337_v13 = vld [vmem:[#allocation7 + $0x180] ss:$24 sps:$4 sm:$0xff]  }
  0xf9   :  { %v244_v19 = vsel %vm243_vm4, %v242_v17, -3.4028235e+38  ;;  %v5338_v14 = vld [vmem:[#allocation7 + $0x480] ss:$24 sps:$4 sm:$0xff]   ;;  %v5339_v17 = vld [vmem:[#allocation7 + $0x1b4] ss:$24 sps:$4 sm:$0xff]   ;;  %2424 = vmatpush1.bf16.msra.mxu0 %v5337_v13  ;;  %v318_v13 = vcombine.high %v6383_v12, %v6383_v12 }
  0xfa   :  { %2465 = vmatpush1.bf16.msra.mxu1 %v5338_v14  ;;  %2425 = vmatprep.subr.bf16.mxu0 %v5339_v17  ;;  %v342_v14 = vcombine.high %v6421_v48, %v6421_v48  ;;  %v319_v17 = vcombine.high %v6387_v15, %v6387_v15 }
  0xfb   :  { %v235_v18 = vpop.xlane.xlu0 %234 }
  0xfc   :  { %v236_v16 = vmul.f32 0.03608439, %v235_v18  ;;  %v5341_v18 = vld [vmem:[#allocation7 + $0x4b4] ss:$24 sps:$4 sm:$0xff]  }
  0xfd   :  { %2466 = vmatprep.subr.bf16.mxu1 %v5341_v18  ;;  %v344_v18 = vcombine.high %v6430_v62, %v6430_v62 }
  0xfe   :  { %v246_v21 = vsel %vm245_vm5, %v244_v19, %v236_v16  ;;  %v5343_v19 = vld [vmem:[#allocation7 + $0x1b0] ss:$24 sps:$4 sm:$0xff]  }
  0xff   :  { %v248_v22 = vsel %vm247_vm6, %v246_v21, -inf  ;;  %v5344_v16 = vld [vmem:[#allocation7 + $0x4b0] ss:$24 sps:$4 sm:$0xff]   ;;  %2426 = vmatpush1.bf16.msra.mxu0 %v5343_v19 }
 0x100   :  { %249 = vmax.xlane.f32.xlu1 %v248_v22  ;;  %v5347_v22 = vld [vmem:[#allocation7 + $0x4e4] ss:$24 sps:$4 sm:$0xff]   ;;  %2467 = vmatpush1.bf16.msra.mxu1 %v5344_v16 }
 0x101   :  { %2468 = vmatprep.subr.bf16.mxu1 %v5347_v22 }
 0x18d   :  { %v250_v23 = vpop.xlane.xlu1 %249 }
 0x18e   :  { %v251_v25 = vsub.f32 %v246_v21, %v250_v23  ;;  %v5345_v21 = vld [vmem:[#allocation7 + $0x1e4] ss:$24 sps:$4 sm:$0xff]   ;;  %v5349_v23 = vld [vmem:[#allocation7 + $0x1e0] ss:$24 sps:$4 sm:$0xff]  }
 0x18f   :  { %2427 = vmatprep.subr.bf16.mxu0 %v5345_v21 }
 0x190   :  { %v252_v26 = vmul.f32 1.442695, %v251_v25  ;;  %v5350_v25 = vld [vmem:[#allocation7 + $0x4e0] ss:$24 sps:$4 sm:$0xff]   ;;  %2428 = vmatpush1.bf16.msra.mxu0 %v5349_v23 }
 0x191   :  { %2469 = vmatpush1.bf16.msra.mxu1 %v5350_v25  ;;  %2429 = vmatprep.subr.bf16.mxu0 %v5351_v33 }
 0x192   :  { %6150 = vpow2.f32 %v252_v26  ;;  %2470 = vmatprep.subr.bf16.mxu1 %v5353_v35 }
 0x194   :  { %2430 = vmatpush1.bf16.msra.mxu0 %v5355_v36  ;;  %v367_v36 = vcombine.high %v6440_v20, %v6440_v20 }
 0x195   :  { %2471 = vmatpush1.bf16.msra.mxu1 %v5356_v37  ;;  %2431 = vmatprep.subr.bf16.mxu0 %v5357_v39 }
 0x196   :  { %2472 = vmatprep.subr.bf16.mxu1 %v5359_v40 }
 0x198   :  { %2432 = vmatpush1.bf16.msra.mxu0 %v5361_v41  ;;  %v368_v41 = vcombine.high %v6445_v30, %v6445_v30 }
 0x199   :  { %2473 = vmatpush1.bf16.msra.mxu1 %v5362_v42  ;;  %2433 = vmatprep.subr.bf16.mxu0 %v5363_v43 }
 0x19c   :  { %v6465_v29 = vpop.eup %6150  ;;  %2434 = vmatpush1.bf16.msra.mxu0 %v5367_v46 }
 0x19d   :  { %v254_v31 = vsel %vm247_vm6, %v6465_v29, 0.0  ;;  %2435 = vmatprep.subr.bf16.mxu0 %v5369_v3 }
 0x19e   :  { %255 = vadd.xlane.f32.xlu0 %v254_v31 }
 0x1a0   :  { %2436 = vmatpush1.bf16.msra.mxu0 %v5373_v4 }
 0x1a1   :  { %2437 = vmatprep.subr.bf16.mxu0 %v5375_v52 }
 0x1a4   :  { %2438 = vmatpush1.bf16.msra.mxu0 %v5379_v54 }
 0x1a5   :  { %2489 = vmatprep.subr.bf16.mxu0 %v5383_v55 }
 0x22b   :  { %v256_v26 = vpop.xlane.xlu0 %255 }
 0x22c   :  { %6152 = vrcp.f32 %v256_v26 }
 0x236   :  { %v6153_v31 = vpop.eup %6152 }
 0x237   :  { %v258_v32 = vmul.f32 %v6153_v31, %v6465_v29  ;;  %v5365_v29 = vld [vmem:[#allocation7 + $0x574] ss:$24 sps:$4 sm:$0xff]  }
 0x238   :  { %2474 = vmatprep.subr.bf16.mxu1 %v5365_v29 }
 0x239   :  { %286 = vperm.xlu0 %5280, %v258_v32   ;;  %261 = vperm.xlu1 %5279, %v258_v32  }
 0x23a   :  { %2475 = vmatpush1.bf16.msra.mxu1 %v5368_v47 }
 0x23b   :  { %2476 = vmatprep.subr.bf16.mxu1 %v5371_v50 }
 0x23d   :  { %5281 = vset.pattern.permute.xlu1 %v6285_v38  ;;  %5284 = vset.pattern.permute.xlu0 %v6286_v44 }
 0x23e   :  { %311 = vperm.xlu1 %5281, %v258_v32   ;;  %2477 = vmatpush1.bf16.msra.mxu1 %v5374_v51 }
 0x23f   :  { %2478 = vmatprep.subr.bf16.mxu1 %v5377_v53 }
 0x242   :  { %5282 = vset.pattern.permute.xlu1 %v6287_v45  ;;  %2479 = vmatpush1.bf16.msra.mxu1 %v5380_v5 }
 0x243   :  { %336 = vperm.xlu1 %5282, %v258_v32   ;;  %2530 = vmatprep.subr.bf16.mxu1 %v5386_v56 }
 0x247   :  { %5283 = vset.pattern.permute.xlu1 %v6286_v44 }
 0x248   :  { %361 = vperm.xlu1 %5283, %v258_v32  }
 0x2b8   :  { %v287_v57 = vpop.permute.xlu0 %286  ;;  %v262_v58 = vpop.permute.xlu1 %261 }
 0x2b9   :  { %v302_v0 = vmul.f32 %v287_v57, %v6404_v28  ;;  %v277_v6 = vmul.f32 %v262_v58, %v6379_v10  ;;  %v343_v28 = vcombine.high %v6423_v49, %v6423_v49  ;;  %v298_v10 = vmul.f32 %v287_v57, %v6400_v24 }
 0x2ba   :  { %v299_v19 = vmul.f32 %v292_v59, %v287_v57  ;;  %v274_v16 = vmul.f32 %v267_v60, %v262_v58  ;;  %v301_v23 = vmul.f32 %v293_v61, %v287_v57  ;;  %v273_v25 = vmul.f32 %v262_v58, %v6375_v7 }
 0x2bb   :  { %v308_v21 = vadd.f32 %v302_v0, %v277_v6  ;;  %v276_v26 = vmul.f32 %v268_v1, %v262_v58  ;;  %v300_v32 = vmul.f32 %v287_v57, %v6402_v27  ;;  %v303_v33 = vmul.f32 %v294_v63, %v287_v57 }
 0x2bc   :  { %v275_v35 = vmul.f32 %v262_v58, %v6377_v9  ;;  %v278_v37 = vmul.f32 %v269_v2, %v262_v58  ;;  %v305_v40 = vadd.f32 %v299_v19, %v274_v16  ;;  %v304_v43 = vadd.f32 %v298_v10, %v273_v25  ;;  %v5392_v19 = vld [vmem:[#allocation7 + $0x3c] ss:$24 sps:$4 sm:$0xff]   ;;  %v5398_v25 = vld [vmem:[#allocation7 + $0x6c] ss:$24 sps:$4 sm:$0xff]  }
 0x2bd   :  { %v312_v22 = vpop.permute.xlu1 %311  ;;  %v307_v42 = vadd.f32 %v301_v23, %v276_v26  ;;  %v5395_v23 = vld [vmem:[#allocation7 + $0x664] ss:$24 sps:$4 sm:$0xff]   ;;  %v5393_v26 = vld [vmem:[#allocation7 + $0x660] ss:$24 sps:$4 sm:$0xff]  }
 0x2be   :  { %v327_v31 = vmul.f32 %v312_v22, %v6387_v15  ;;  %v324_v24 = vmul.f32 %v317_v8, %v312_v22  ;;  %v326_v38 = vmul.f32 %v318_v13, %v312_v22  ;;  %v323_v7 = vmul.f32 %v312_v22, %v6381_v11 }
 0x2bf   :  { %v369_v15 = vcombine.high %v6448_v34, %v6448_v34  ;;  %v325_v9 = vmul.f32 %v312_v22, %v6383_v12  ;;  %v328_v44 = vmul.f32 %v319_v17, %v312_v22  ;;  %v306_v4 = vadd.f32 %v300_v32, %v275_v35  ;;  %v5390_v22 = vld [vmem:[#allocation7 + $0x38] ss:$24 sps:$4 sm:$0xff]   ;;  %v5401_v32 = vld [vmem:[#allocation7 + $0x694] ss:$24 sps:$4 sm:$0xff]  }
 0x2c0   :  { %v333_v39 = vadd.f32 %v327_v31, %v308_v21  ;;  %v330_v3 = vadd.f32 %v324_v24, %v305_v40  ;;  %v332_v50 = vadd.f32 %v326_v38, %v307_v42  ;;  %v309_v51 = vadd.f32 %v303_v33, %v278_v37  ;;  %v5387_v21 = vld [vmem:[#allocation7 + $0x630] ss:$24 sps:$4 sm:$0xff]   ;;  %v5404_v33 = vld [vmem:[#allocation7 + $0x9c] ss:$24 sps:$4 sm:$0xff]   ;;  %v5410_v24 = vld [vmem:[#allocation7 + $0xcc] ss:$24 sps:$4 sm:$0xff]  }
 0x2c1   :  { %v329_v11 = vadd.f32 %v323_v7, %v304_v43  ;;  %v331_v5 = vadd.f32 %v325_v9, %v306_v4  ;;  %v5396_v31 = vld [vmem:[#allocation7 + $0x68] ss:$24 sps:$4 sm:$0xff]   ;;  %v5407_v37 = vld [vmem:[#allocation7 + $0x6c4] ss:$24 sps:$4 sm:$0xff]   ;;  %v5413_v40 = vld [vmem:[#allocation7 + $0x6f4] ss:$24 sps:$4 sm:$0xff]  }
 0x2c2   :  { %v337_v27 = vpop.permute.xlu1 %336  ;;  %v334_v58 = vadd.f32 %v328_v44, %v309_v51  ;;  %v5399_v35 = vld [vmem:[#allocation7 + $0x690] ss:$24 sps:$4 sm:$0xff]   ;;  %v5405_v38 = vld [vmem:[#allocation7 + $0x6c0] ss:$24 sps:$4 sm:$0xff]   ;;  %v5422_v42 = vld [vmem:[#allocation7 + $0x12c] ss:$24 sps:$4 sm:$0xff]  }
 0x2c3   :  { %v352_v29 = vmul.f32 %v337_v27, %v6430_v62  ;;  %v349_v45 = vmul.f32 %v342_v14, %v337_v27  ;;  %v351_v46 = vmul.f32 %v343_v28, %v337_v27  ;;  %v348_v47 = vmul.f32 %v337_v27, %v6421_v48  ;;  %v5411_v7 = vld [vmem:[#allocation7 + $0x6f0] ss:$24 sps:$4 sm:$0xff]   ;;  %v5417_v43 = vld [vmem:[#allocation7 + $0x720] ss:$24 sps:$4 sm:$0xff]   ;;  %v5425_v44 = vld [vmem:[#allocation7 + $0x754] ss:$24 sps:$4 sm:$0xff]  }
 0x2c4   :  { %v350_v52 = vmul.f32 %v337_v27, %v6423_v49  ;;  %v353_v53 = vmul.f32 %v344_v18, %v337_v27  ;;  %v5384_v18 = vld [vmem:[#allocation7 + $0x8] ss:$24 sps:$4 sm:$0xff]   ;;  %v5419_v27 = vld [vmem:[#allocation7 + $0x724] ss:$24 sps:$4 sm:$0xff]   ;;  %v5437_v51 = vld [vmem:[#allocation7 + $0x7b4] ss:$24 sps:$4 sm:$0xff]  }
 0x2c5   :  { %v358_v54 = vadd.f32 %v352_v29, %v333_v39  ;;  %v355_v56 = vadd.f32 %v349_v45, %v330_v3  ;;  %v357_v12 = vadd.f32 %v351_v46, %v332_v50  ;;  %v354_v57 = vadd.f32 %v348_v47, %v329_v11  ;;  %v5408_v39 = vld [vmem:[#allocation7 + $0xc8] ss:$24 sps:$4 sm:$0xff]   ;;  %v5428_v29 = vld [vmem:[#allocation7 + $0x15c] ss:$24 sps:$4 sm:$0xff]   ;;  %v5426_v46 = vld [vmem:[#allocation7 + $0x158] ss:$24 sps:$4 sm:$0xff]  }
 0x2c6   :  { %v356_v61 = vadd.f32 %v350_v52, %v331_v5  ;;  %v359_v0 = vadd.f32 %v353_v53, %v334_v58  ;;  %v5420_v9 = vld [vmem:[#allocation7 + $0x128] ss:$24 sps:$4 sm:$0xff]   ;;  %v5431_v47 = vld [vmem:[#allocation7 + $0x784] ss:$24 sps:$4 sm:$0xff]   ;;  %v5438_v53 = vld [vmem:[#allocation7 + $0x1b8] ss:$24 sps:$4 sm:$0xff]  }
 0x2c7   :  { %v362_v55 = vpop.permute.xlu1 %361  ;;  %v5423_v45 = vld [vmem:[#allocation7 + $0x750] ss:$24 sps:$4 sm:$0xff]   ;;  %v5434_v3 = vld [vmem:[#allocation7 + $0x18c] ss:$24 sps:$4 sm:$0xff]   ;;  %v5429_v50 = vld [vmem:[#allocation7 + $0x780] ss:$24 sps:$4 sm:$0xff]  }
 0x2c8   :  { %v377_v62 = vmul.f32 %v362_v55, %v6448_v34  ;;  %v374_v59 = vmul.f32 %v367_v36, %v362_v55  ;;  %v376_v60 = vmul.f32 %v368_v41, %v362_v55  ;;  %v373_v48 = vmul.f32 %v362_v55, %v6440_v20  ;;  %v5381_v34 = vld [vmem:[#allocation7 + $0x600] ss:$24 sps:$4 sm:$0xff]   ;;  %v5416_v41 = vld [vmem:[#allocation7 + $0xfc] ss:$24 sps:$4 sm:$0xff]   ;;  %v5435_v52 = vld [vmem:[#allocation7 + $0x7b0] ss:$24 sps:$4 sm:$0xff]  }
 0x2c9   :  { %v375_v63 = vmul.f32 %v362_v55, %v6445_v30  ;;  %v378_v1 = vmul.f32 %v369_v15, %v362_v55  ;;  %v5389_v30 = vld [vmem:[#allocation7 + $0x634] ss:$24 sps:$4 sm:$0xff]   ;;  %v5402_v36 = vld [vmem:[#allocation7 + $0x98] ss:$24 sps:$4 sm:$0xff]   ;;  %v5432_v4 = vld [vmem:[#allocation7 + $0x188] ss:$24 sps:$4 sm:$0xff]  }
 0x2ca   :  { %v380_v49 = vadd.f32 %v374_v59, %v355_v56  ;;  %v382_v2 = vadd.f32 %v376_v60, %v357_v12  ;;  %v379_v6 = vadd.f32 %v373_v48, %v354_v57  ;;  %v6514_v8 = vadd.f32 %v377_v62, %v358_v54  ;;  %v5414_v15 = vld [vmem:[#allocation7 + $0xf8] ss:$24 sps:$4 sm:$0xff]   ;;  %v5440_v11 = vld [vmem:[#allocation7 + $0x1bc] ss:$24 sps:$4 sm:$0xff]   ;;  %v5446_v5 = vld [vmem:[#allocation7 + $0x1ec] ss:$24 sps:$4 sm:$0xff]  }
 0x2cb   :  { %v381_v13 = vadd.f32 %v375_v63, %v356_v61  ;;  %v384_v14 = vadd.f32 %v378_v1, %v359_v0  ;;  %v5443_v54 = vld [vmem:[#allocation7 + $0x7e4] ss:$24 sps:$4 sm:$0xff]   ;;  %v5441_v55 = vld [vmem:[#allocation7 + $0x7e0] ss:$24 sps:$4 sm:$0xff]   ;;  %v5449_v12 = vld [vmem:[#allocation7 + $0x814] ss:$24 sps:$4 sm:$0xff]  }
 0x2cc   :  { %v6516_v28 = vpack.c.bf16 %v380_v49, %v380_v49  ;;  %v6518_v17 = vpack.c.bf16 %v382_v2, %v382_v2  ;;  %v6520_v10 = vpack.c.bf16 %v379_v6, %v379_v6  ;;  %v5444_v56 = vld [vmem:[#allocation7 + $0x1e8] ss:$24 sps:$4 sm:$0xff]   ;;  %v5452_v57 = vld [vmem:[#allocation7 + $0x21c] ss:$24 sps:$4 sm:$0xff]   ;;  %v5450_v62 = vld [vmem:[#allocation7 + $0x218] ss:$24 sps:$4 sm:$0xff]  }
 0x2cd   :  { %v6522_v20 = vpack.c.bf16 %v381_v13, %v381_v13  ;;  %v6528_v16 = vpack.c.bf16 %v384_v14, %v384_v14  ;;  %v5447_v58 = vld [vmem:[#allocation7 + $0x810] ss:$24 sps:$4 sm:$0xff]   ;;  %v5455_v59 = vld [vmem:[#allocation7 + $0x844] ss:$24 sps:$4 sm:$0xff]   ;;  %v5453_v48 = vld [vmem:[#allocation7 + $0x840] ss:$24 sps:$4 sm:$0xff]  }
 0x2ce   :  { %2439 = vmatprep.mubr.bf16.mxu0 %v6516_v28  ;;  %2480 = vmatprep.mubr.bf16.mxu1 %v6518_v17  ;;  %v5458_v60 = vld [vmem:[#allocation7 + $0x24c] ss:$24 sps:$4 sm:$0xff]   ;;  %v5456_v61 = vld [vmem:[#allocation7 + $0x248] ss:$24 sps:$4 sm:$0xff]   ;;  %v5464_v0 = vld [vmem:[#allocation7 + $0x27c] ss:$24 sps:$4 sm:$0xff]  }
 0x2cf   :  { %2440 = vmatmul.mubr.bf16.vlgmr.msra.gmra.mrb[0].mxu0 %v6520_v10  ;;  %2481 = vmatmul.mubr.bf16.vlgmr.msra.gmra.mrb[0].mxu1 %v6522_v20  ;;  %v5461_v63 = vld [vmem:[#allocation7 + $0x874] ss:$24 sps:$4 sm:$0xff]   ;;  %v5459_v1 = vld [vmem:[#allocation7 + $0x870] ss:$24 sps:$4 sm:$0xff]   ;;  %v5467_v2 = vld [vmem:[#allocation7 + $0x8a4] ss:$24 sps:$4 sm:$0xff]  }
 0x2d0   :  { %2490 = vmatpush1.bf16.msra.mxu0 %v5381_v34  ;;  %2531 = vmatpush1.bf16.msra.mxu1 %v5384_v18  ;;  %v5462_v49 = vld [vmem:[#allocation7 + $0x278] ss:$24 sps:$4 sm:$0xff]   ;;  %v5470_v6 = vld [vmem:[#allocation7 + $0x2ac] ss:$24 sps:$4 sm:$0xff]   ;;  %v5468_v14 = vld [vmem:[#allocation7 + $0x2a8] ss:$24 sps:$4 sm:$0xff]  }
 0x2d1   :  { %2521 = vmatprep.mubr.bf16.mxu0 %v6528_v16  ;;  %2562 = vmatprep.mubr.bf16.mxu1 %v6516_v28  ;;  %v5465_v13 = vld [vmem:[#allocation7 + $0x8a0] ss:$24 sps:$4 sm:$0xff]   ;;  %v5473_v34 = vld [vmem:[#allocation7 + $0x8d4] ss:$24 sps:$4 sm:$0xff]  }
 0x2d2   :  { %2491 = vmatprep.subr.bf16.mxu0 %v5389_v30  ;;  %2532 = vmatprep.subr.bf16.mxu1 %v5392_v19  ;;  %v5476_v18 = vld [vmem:[#allocation7 + $0x2dc] ss:$24 sps:$4 sm:$0xff]   ;;  %v5471_v30 = vld [vmem:[#allocation7 + $0x8d0] ss:$24 sps:$4 sm:$0xff]  }
 0x2d3   :  { %v5474_v19 = vld [vmem:[#allocation7 + $0x2d8] ss:$24 sps:$4 sm:$0xff]  }
 0x2d4   :  { %2492 = vmatpush1.bf16.msra.mxu0 %v5387_v21  ;;  %2533 = vmatpush1.bf16.msra.mxu1 %v5390_v22  ;;  %v5479_v21 = vld [vmem:[#allocation7 + $0x30c] ss:$24 sps:$4 sm:$0xff]  }
 0x2d5   :  { %2493 = vmatprep.subr.bf16.mxu0 %v5395_v23  ;;  %2534 = vmatprep.subr.bf16.mxu1 %v5398_v25  ;;  %v5482_v22 = vld [vmem:[#allocation7 + $0x60c] ss:$24 sps:$4 sm:$0xff]   ;;  %v5477_v23 = vld [vmem:[#allocation7 + $0x308] ss:$24 sps:$4 sm:$0xff]   ;;  %v6534_v25 = vpack.c.bf16 %v6514_v8, %v6514_v8 }
 0x2d6   :  { %v5494_v8 = vld [vmem:[#allocation7 + $0x66c] ss:$24 sps:$4 sm:$0xff]  }
 0x2d8   :  { %2494 = vmatpush1.bf16.msra.mxu0 %v5393_v26  ;;  %2535 = vmatpush1.bf16.msra.mxu1 %v5396_v31  ;;  %v5480_v26 = vld [vmem:[#allocation7 + $0x608] ss:$24 sps:$4 sm:$0xff]   ;;  %v5485_v31 = vld [vmem:[#allocation7 + $0x33c] ss:$24 sps:$4 sm:$0xff]  }
 0x2d9   :  { %2495 = vmatprep.subr.bf16.mxu0 %v5401_v32  ;;  %2536 = vmatprep.subr.bf16.mxu1 %v5404_v33  ;;  %v5488_v32 = vld [vmem:[#allocation7 + $0x63c] ss:$24 sps:$4 sm:$0xff]   ;;  %v5483_v33 = vld [vmem:[#allocation7 + $0x338] ss:$24 sps:$4 sm:$0xff]  }
 0x2dc   :  { %2496 = vmatpush1.bf16.msra.mxu0 %v5399_v35  ;;  %2537 = vmatpush1.bf16.msra.mxu1 %v5402_v36  ;;  %v5486_v35 = vld [vmem:[#allocation7 + $0x638] ss:$24 sps:$4 sm:$0xff]   ;;  %v5491_v36 = vld [vmem:[#allocation7 + $0x36c] ss:$24 sps:$4 sm:$0xff]  }
 0x2dd   :  { %2497 = vmatprep.subr.bf16.mxu0 %v5407_v37  ;;  %2538 = vmatprep.subr.bf16.mxu1 %v5410_v24  ;;  %v5489_v37 = vld [vmem:[#allocation7 + $0x368] ss:$24 sps:$4 sm:$0xff]  }
 0x2de   :  { %v5492_v24 = vld [vmem:[#allocation7 + $0x668] ss:$24 sps:$4 sm:$0xff]  }
 0x2e0   :  { %2498 = vmatpush1.bf16.msra.mxu0 %v5405_v38  ;;  %2539 = vmatpush1.bf16.msra.mxu1 %v5408_v39  ;;  %v5497_v38 = vld [vmem:[#allocation7 + $0x39c] ss:$24 sps:$4 sm:$0xff]  }
 0x2e1   :  { %2499 = vmatprep.subr.bf16.mxu0 %v5413_v40  ;;  %2540 = vmatprep.subr.bf16.mxu1 %v5416_v41  ;;  %v5500_v39 = vld [vmem:[#allocation7 + $0x69c] ss:$24 sps:$4 sm:$0xff]   ;;  %v5495_v40 = vld [vmem:[#allocation7 + $0x398] ss:$24 sps:$4 sm:$0xff]  }
 0x2e2   :  { %v5498_v41 = vld [vmem:[#allocation7 + $0x698] ss:$24 sps:$4 sm:$0xff]  }
 0x2e4   :  { %2500 = vmatpush1.bf16.msra.mxu0 %v5411_v7  ;;  %2541 = vmatpush1.bf16.msra.mxu1 %v5414_v15  ;;  %v5503_v7 = vld [vmem:[#allocation7 + $0x3cc] ss:$24 sps:$4 sm:$0xff]  }
 0x2e5   :  { %2501 = vmatprep.subr.bf16.mxu0 %v5419_v27  ;;  %2542 = vmatprep.subr.bf16.mxu1 %v5422_v42  ;;  %v5506_v15 = vld [vmem:[#allocation7 + $0x6cc] ss:$24 sps:$4 sm:$0xff]   ;;  %v5501_v27 = vld [vmem:[#allocation7 + $0x3c8] ss:$24 sps:$4 sm:$0xff]  }
 0x2e6   :  { %v5504_v42 = vld [vmem:[#allocation7 + $0x6c8] ss:$24 sps:$4 sm:$0xff]  }
 0x2e8   :  { %2502 = vmatpush1.bf16.msra.mxu0 %v5417_v43  ;;  %2543 = vmatpush1.bf16.msra.mxu1 %v5420_v9  ;;  %v5509_v43 = vld [vmem:[#allocation7 + $0x3fc] ss:$24 sps:$4 sm:$0xff]  }
 0x2e9   :  { %2503 = vmatprep.subr.bf16.mxu0 %v5425_v44  ;;  %2544 = vmatprep.subr.bf16.mxu1 %v5428_v29  ;;  %v5512_v9 = vld [vmem:[#allocation7 + $0x6fc] ss:$24 sps:$4 sm:$0xff]   ;;  %v5507_v44 = vld [vmem:[#allocation7 + $0x3f8] ss:$24 sps:$4 sm:$0xff]  }
 0x2ea   :  { %v5510_v29 = vld [vmem:[#allocation7 + $0x6f8] ss:$24 sps:$4 sm:$0xff]  }
 0x2ec   :  { %2504 = vmatpush1.bf16.msra.mxu0 %v5423_v45  ;;  %2545 = vmatpush1.bf16.msra.mxu1 %v5426_v46  ;;  %v5515_v45 = vld [vmem:[#allocation7 + $0x42c] ss:$24 sps:$4 sm:$0xff]  }
 0x2ed   :  { %2505 = vmatprep.subr.bf16.mxu0 %v5431_v47  ;;  %2546 = vmatprep.subr.bf16.mxu1 %v5434_v3  ;;  %v5518_v46 = vld [vmem:[#allocation7 + $0x72c] ss:$24 sps:$4 sm:$0xff]   ;;  %v5513_v47 = vld [vmem:[#allocation7 + $0x428] ss:$24 sps:$4 sm:$0xff]  }
 0x2ee   :  { %v5516_v3 = vld [vmem:[#allocation7 + $0x728] ss:$24 sps:$4 sm:$0xff]  }
 0x2f0   :  { %2506 = vmatpush1.bf16.msra.mxu0 %v5429_v50  ;;  %2547 = vmatpush1.bf16.msra.mxu1 %v5432_v4  ;;  %v5521_v50 = vld [vmem:[#allocation7 + $0x45c] ss:$24 sps:$4 sm:$0xff]  }
 0x2f1   :  { %2507 = vmatprep.subr.bf16.mxu0 %v5437_v51  ;;  %2548 = vmatprep.subr.bf16.mxu1 %v5440_v11  ;;  %v5524_v4 = vld [vmem:[#allocation7 + $0x75c] ss:$24 sps:$4 sm:$0xff]   ;;  %v5519_v51 = vld [vmem:[#allocation7 + $0x458] ss:$24 sps:$4 sm:$0xff]  }
 0x2f2   :  { %v5522_v11 = vld [vmem:[#allocation7 + $0x758] ss:$24 sps:$4 sm:$0xff]  }
 0x2f4   :  { %2508 = vmatpush1.bf16.msra.mxu0 %v5435_v52  ;;  %2549 = vmatpush1.bf16.msra.mxu1 %v5438_v53  ;;  %v5527_v52 = vld [vmem:[#allocation7 + $0x48c] ss:$24 sps:$4 sm:$0xff]  }
 0x2f5   :  { %2509 = vmatprep.subr.bf16.mxu0 %v5443_v54  ;;  %2550 = vmatprep.subr.bf16.mxu1 %v5446_v5  ;;  %v5530_v53 = vld [vmem:[#allocation7 + $0x78c] ss:$24 sps:$4 sm:$0xff]   ;;  %v5525_v54 = vld [vmem:[#allocation7 + $0x488] ss:$24 sps:$4 sm:$0xff]  }
 0x2f6   :  { %v5528_v5 = vld [vmem:[#allocation7 + $0x788] ss:$24 sps:$4 sm:$0xff]  }
 0x2f8   :  { %2510 = vmatpush1.bf16.msra.mxu0 %v5441_v55  ;;  %2551 = vmatpush1.bf16.msra.mxu1 %v5444_v56  ;;  %v5533_v55 = vld [vmem:[#allocation7 + $0x4bc] ss:$24 sps:$4 sm:$0xff]  }
 0x2f9   :  { %2511 = vmatprep.subr.bf16.mxu0 %v5449_v12  ;;  %2552 = vmatprep.subr.bf16.mxu1 %v5452_v57  ;;  %v5536_v56 = vld [vmem:[#allocation7 + $0x7bc] ss:$24 sps:$4 sm:$0xff]   ;;  %v5531_v12 = vld [vmem:[#allocation7 + $0x4b8] ss:$24 sps:$4 sm:$0xff]  }
 0x2fa   :  { %v5534_v57 = vld [vmem:[#allocation7 + $0x7b8] ss:$24 sps:$4 sm:$0xff]  }
 0x2fc   :  { %2512 = vmatpush1.bf16.msra.mxu0 %v5447_v58  ;;  %2553 = vmatpush1.bf16.msra.mxu1 %v5450_v62  ;;  %v5539_v58 = vld [vmem:[#allocation7 + $0x4ec] ss:$24 sps:$4 sm:$0xff]  }
 0x2fd   :  { %2513 = vmatprep.subr.bf16.mxu0 %v5455_v59  ;;  %2554 = vmatprep.subr.bf16.mxu1 %v5458_v60  ;;  %v5542_v62 = vld [vmem:[#allocation7 + $0x7ec] ss:$24 sps:$4 sm:$0xff]   ;;  %v5537_v59 = vld [vmem:[#allocation7 + $0x4e8] ss:$24 sps:$4 sm:$0xff]  }
 0x2fe   :  { %v5540_v60 = vld [vmem:[#allocation7 + $0x7e8] ss:$24 sps:$4 sm:$0xff]  }
 0x300   :  { %2514 = vmatpush1.bf16.msra.mxu0 %v5453_v48  ;;  %2555 = vmatpush1.bf16.msra.mxu1 %v5456_v61  ;;  %v5545_v48 = vld [vmem:[#allocation7 + $0x51c] ss:$24 sps:$4 sm:$0xff]  }
 0x301   :  { %2515 = vmatprep.subr.bf16.mxu0 %v5461_v63  ;;  %2556 = vmatprep.subr.bf16.mxu1 %v5464_v0  ;;  %v5548_v61 = vld [vmem:[#allocation7 + $0x81c] ss:$24 sps:$4 sm:$0xff]   ;;  %v5543_v63 = vld [vmem:[#allocation7 + $0x518] ss:$24 sps:$4 sm:$0xff]  }
 0x302   :  { %v5546_v0 = vld [vmem:[#allocation7 + $0x818] ss:$24 sps:$4 sm:$0xff]  }
 0x304   :  { %2516 = vmatpush1.bf16.msra.mxu0 %v5459_v1  ;;  %2557 = vmatpush1.bf16.msra.mxu1 %v5462_v49  ;;  %v5551_v1 = vld [vmem:[#allocation7 + $0x54c] ss:$24 sps:$4 sm:$0xff]  }
 0x305   :  { %2517 = vmatprep.subr.bf16.mxu0 %v5467_v2  ;;  %2558 = vmatprep.subr.bf16.mxu1 %v5470_v6  ;;  %v5554_v49 = vld [vmem:[#allocation7 + $0x84c] ss:$24 sps:$4 sm:$0xff]   ;;  %v5549_v2 = vld [vmem:[#allocation7 + $0x548] ss:$24 sps:$4 sm:$0xff]  }
 0x306   :  { %v5552_v6 = vld [vmem:[#allocation7 + $0x848] ss:$24 sps:$4 sm:$0xff]  }
 0x308   :  { %2518 = vmatpush1.bf16.msra.mxu0 %v5465_v13  ;;  %2559 = vmatpush1.bf16.msra.mxu1 %v5468_v14  ;;  %v5557_v13 = vld [vmem:[#allocation7 + $0x57c] ss:$24 sps:$4 sm:$0xff]  }
 0x309   :  { %2519 = vmatprep.subr.bf16.mxu0 %v5473_v34  ;;  %2560 = vmatprep.subr.bf16.mxu1 %v5476_v18  ;;  %v5560_v14 = vld [vmem:[#allocation7 + $0x87c] ss:$24 sps:$4 sm:$0xff]   ;;  %v5555_v34 = vld [vmem:[#allocation7 + $0x578] ss:$24 sps:$4 sm:$0xff]  }
 0x30a   :  { %v5558_v18 = vld [vmem:[#allocation7 + $0x878] ss:$24 sps:$4 sm:$0xff]  }
 0x30c   :  { %2520 = vmatpush1.bf16.msra.mxu0 %v5471_v30  ;;  %2561 = vmatpush1.bf16.msra.mxu1 %v5474_v19  ;;  %v5563_v30 = vld [vmem:[#allocation7 + $0x5ac] ss:$24 sps:$4 sm:$0xff]  }
 0x30d   :  { %2571 = vmatprep.subr.bf16.mxu0 %v5479_v21  ;;  %2612 = vmatprep.subr.bf16.mxu1 %v5482_v22  ;;  %v5566_v19 = vld [vmem:[#allocation7 + $0x8ac] ss:$24 sps:$4 sm:$0xff]   ;;  %v5561_v21 = vld [vmem:[#allocation7 + $0x5a8] ss:$24 sps:$4 sm:$0xff]  }
 0x30e   :  { %v5564_v22 = vld [vmem:[#allocation7 + $0x8a8] ss:$24 sps:$4 sm:$0xff]  }
 0x30f   :  { %2522 = vmatmul.mubr.bf16.vlgmr.msra.gmra.mrb[4].mxu0 %v6534_v25  ;;  %2563 = vmatmul.mubr.bf16.vlgmr.msra.gmra.mrb[4].mxu1 %v6520_v10 }
 0x310   :  { %2572 = vmatpush1.bf16.msra.mxu0 %v5477_v23  ;;  %2603 = vmatprep.mubr.bf16.mxu0 %v6518_v17  ;;  %v5569_v23 = vld [vmem:[#allocation7 + $0x5dc] ss:$24 sps:$4 sm:$0xff]  }
 0x311   :  { %2613 = vmatpush1.bf16.msra.mxu1 %v5480_v26  ;;  %2644 = vmatprep.mubr.bf16.mxu1 %v6528_v16  ;;  %v5572_v26 = vld [vmem:[#allocation7 + $0x8dc] ss:$24 sps:$4 sm:$0xff]  }
 0x312   :  { %2573 = vmatprep.subr.bf16.mxu0 %v5485_v31  ;;  %2614 = vmatprep.subr.bf16.mxu1 %v5488_v32  ;;  %v5567_v31 = vld [vmem:[#allocation7 + $0x5d8] ss:$24 sps:$4 sm:$0xff]  }
 0x313   :  { %v5570_v32 = vld [vmem:[#allocation7 + $0x8d8] ss:$24 sps:$4 sm:$0xff]  }
 0x314   :  { %2574 = vmatpush1.bf16.msra.mxu0 %v5483_v33  ;;  %v5575_v33 = vld [vmem:[#allocation7 + $0x14] ss:$24 sps:$4 sm:$0xff]  }
 0x315   :  { %2615 = vmatpush1.bf16.msra.mxu1 %v5486_v35  ;;  %2575 = vmatprep.subr.bf16.mxu0 %v5491_v36  ;;  %v5578_v35 = vld [vmem:[#allocation7 + $0x314] ss:$24 sps:$4 sm:$0xff]   ;;  %v5573_v36 = vld [vmem:[#allocation7 + $0x10] ss:$24 sps:$4 sm:$0xff]  }
 0x316   :  { %2616 = vmatprep.subr.bf16.mxu1 %v5494_v8  ;;  %v5576_v8 = vld [vmem:[#allocation7 + $0x310] ss:$24 sps:$4 sm:$0xff]  }
 0x318   :  { %2576 = vmatpush1.bf16.msra.mxu0 %v5489_v37  ;;  %v5581_v37 = vld [vmem:[#allocation7 + $0x44] ss:$24 sps:$4 sm:$0xff]  }
 0x319   :  { %2617 = vmatpush1.bf16.msra.mxu1 %v5492_v24  ;;  %2577 = vmatprep.subr.bf16.mxu0 %v5497_v38  ;;  %v5584_v24 = vld [vmem:[#allocation7 + $0x344] ss:$24 sps:$4 sm:$0xff]   ;;  %v5579_v38 = vld [vmem:[#allocation7 + $0x40] ss:$24 sps:$4 sm:$0xff]  }
 0x31a   :  { %2618 = vmatprep.subr.bf16.mxu1 %v5500_v39  ;;  %v5582_v39 = vld [vmem:[#allocation7 + $0x340] ss:$24 sps:$4 sm:$0xff]  }
 0x31c   :  { %2578 = vmatpush1.bf16.msra.mxu0 %v5495_v40  ;;  %v5587_v40 = vld [vmem:[#allocation7 + $0x74] ss:$24 sps:$4 sm:$0xff]  }
 0x31d   :  { %2619 = vmatpush1.bf16.msra.mxu1 %v5498_v41  ;;  %2579 = vmatprep.subr.bf16.mxu0 %v5503_v7  ;;  %v5590_v41 = vld [vmem:[#allocation7 + $0x374] ss:$24 sps:$4 sm:$0xff]   ;;  %v5585_v7 = vld [vmem:[#allocation7 + $0x70] ss:$24 sps:$4 sm:$0xff]  }
 0x31e   :  { %2620 = vmatprep.subr.bf16.mxu1 %v5506_v15  ;;  %v5588_v15 = vld [vmem:[#allocation7 + $0x370] ss:$24 sps:$4 sm:$0xff]  }
 0x320   :  { %2580 = vmatpush1.bf16.msra.mxu0 %v5501_v27  ;;  %v5593_v27 = vld [vmem:[#allocation7 + $0xa4] ss:$24 sps:$4 sm:$0xff]  }
 0x321   :  { %2621 = vmatpush1.bf16.msra.mxu1 %v5504_v42  ;;  %2581 = vmatprep.subr.bf16.mxu0 %v5509_v43  ;;  %v5596_v42 = vld [vmem:[#allocation7 + $0x3a4] ss:$24 sps:$4 sm:$0xff]   ;;  %v5591_v43 = vld [vmem:[#allocation7 + $0xa0] ss:$24 sps:$4 sm:$0xff]  }
 0x322   :  { %2622 = vmatprep.subr.bf16.mxu1 %v5512_v9  ;;  %v5599_v9 = vld [vmem:[#allocation7 + $0xd4] ss:$24 sps:$4 sm:$0xff]  }
 0x324   :  { %2582 = vmatpush1.bf16.msra.mxu0 %v5507_v44  ;;  %v5602_v44 = vld [vmem:[#allocation7 + $0x3d4] ss:$24 sps:$4 sm:$0xff]  }
 0x325   :  { %2623 = vmatpush1.bf16.msra.mxu1 %v5510_v29  ;;  %2583 = vmatprep.subr.bf16.mxu0 %v5515_v45  ;;  %v5600_v29 = vld [vmem:[#allocation7 + $0x3d0] ss:$24 sps:$4 sm:$0xff]   ;;  %v5605_v45 = vld [vmem:[#allocation7 + $0x104] ss:$24 sps:$4 sm:$0xff]  }
 0x326   :  { %2624 = vmatprep.subr.bf16.mxu1 %v5518_v46  ;;  %v5608_v46 = vld [vmem:[#allocation7 + $0x404] ss:$24 sps:$4 sm:$0xff]  }
 0x328   :  { %2584 = vmatpush1.bf16.msra.mxu0 %v5513_v47  ;;  %v5603_v47 = vld [vmem:[#allocation7 + $0x100] ss:$24 sps:$4 sm:$0xff]  }
 0x329   :  { %2625 = vmatpush1.bf16.msra.mxu1 %v5516_v3  ;;  %2585 = vmatprep.subr.bf16.mxu0 %v5521_v50  ;;  %v5606_v3 = vld [vmem:[#allocation7 + $0x400] ss:$24 sps:$4 sm:$0xff]   ;;  %v5611_v50 = vld [vmem:[#allocation7 + $0x134] ss:$24 sps:$4 sm:$0xff]  }
 0x32a   :  { %2626 = vmatprep.subr.bf16.mxu1 %v5524_v4  ;;  %v5614_v4 = vld [vmem:[#allocation7 + $0x434] ss:$24 sps:$4 sm:$0xff]  }
 0x32c   :  { %2586 = vmatpush1.bf16.msra.mxu0 %v5519_v51  ;;  %v5609_v51 = vld [vmem:[#allocation7 + $0x130] ss:$24 sps:$4 sm:$0xff]  }
 0x32d   :  { %2627 = vmatpush1.bf16.msra.mxu1 %v5522_v11  ;;  %2587 = vmatprep.subr.bf16.mxu0 %v5527_v52  ;;  %v5612_v11 = vld [vmem:[#allocation7 + $0x430] ss:$24 sps:$4 sm:$0xff]   ;;  %v5617_v52 = vld [vmem:[#allocation7 + $0x164] ss:$24 sps:$4 sm:$0xff]  }
 0x32e   :  { %2628 = vmatprep.subr.bf16.mxu1 %v5530_v53  ;;  %v5620_v53 = vld [vmem:[#allocation7 + $0x464] ss:$24 sps:$4 sm:$0xff]  }
 0x330   :  { %2588 = vmatpush1.bf16.msra.mxu0 %v5525_v54  ;;  %v5615_v54 = vld [vmem:[#allocation7 + $0x160] ss:$24 sps:$4 sm:$0xff]  }
 0x331   :  { %2629 = vmatpush1.bf16.msra.mxu1 %v5528_v5  ;;  %2589 = vmatprep.subr.bf16.mxu0 %v5533_v55  ;;  %v5618_v5 = vld [vmem:[#allocation7 + $0x460] ss:$24 sps:$4 sm:$0xff]   ;;  %v5623_v55 = vld [vmem:[#allocation7 + $0x194] ss:$24 sps:$4 sm:$0xff]  }
 0x332   :  { %2630 = vmatprep.subr.bf16.mxu1 %v5536_v56  ;;  %v5626_v56 = vld [vmem:[#allocation7 + $0x494] ss:$24 sps:$4 sm:$0xff]  }
 0x334   :  { %2590 = vmatpush1.bf16.msra.mxu0 %v5531_v12  ;;  %v5621_v12 = vld [vmem:[#allocation7 + $0x190] ss:$24 sps:$4 sm:$0xff]  }
 0x335   :  { %2631 = vmatpush1.bf16.msra.mxu1 %v5534_v57  ;;  %2591 = vmatprep.subr.bf16.mxu0 %v5539_v58  ;;  %v5624_v57 = vld [vmem:[#allocation7 + $0x490] ss:$24 sps:$4 sm:$0xff]   ;;  %v5629_v58 = vld [vmem:[#allocation7 + $0x1c4] ss:$24 sps:$4 sm:$0xff]  }
 0x336   :  { %2632 = vmatprep.subr.bf16.mxu1 %v5542_v62  ;;  %v5632_v62 = vld [vmem:[#allocation7 + $0x4c4] ss:$24 sps:$4 sm:$0xff]  }
 0x338   :  { %2592 = vmatpush1.bf16.msra.mxu0 %v5537_v59  ;;  %v5627_v59 = vld [vmem:[#allocation7 + $0x1c0] ss:$24 sps:$4 sm:$0xff]  }
 0x339   :  { %2633 = vmatpush1.bf16.msra.mxu1 %v5540_v60  ;;  %2593 = vmatprep.subr.bf16.mxu0 %v5545_v48  ;;  %v5630_v60 = vld [vmem:[#allocation7 + $0x4c0] ss:$24 sps:$4 sm:$0xff]   ;;  %v5635_v48 = vld [vmem:[#allocation7 + $0x1f4] ss:$24 sps:$4 sm:$0xff]  }
 0x33a   :  { %2634 = vmatprep.subr.bf16.mxu1 %v5548_v61  ;;  %v5638_v61 = vld [vmem:[#allocation7 + $0x4f4] ss:$24 sps:$4 sm:$0xff]  }
 0x33c   :  { %2594 = vmatpush1.bf16.msra.mxu0 %v5543_v63  ;;  %v5633_v63 = vld [vmem:[#allocation7 + $0x1f0] ss:$24 sps:$4 sm:$0xff]  }
 0x33d   :  { %2635 = vmatpush1.bf16.msra.mxu1 %v5546_v0  ;;  %2595 = vmatprep.subr.bf16.mxu0 %v5551_v1  ;;  %v5636_v0 = vld [vmem:[#allocation7 + $0x4f0] ss:$24 sps:$4 sm:$0xff]   ;;  %v5641_v1 = vld [vmem:[#allocation7 + $0x224] ss:$24 sps:$4 sm:$0xff]  }
 0x33e   :  { %2636 = vmatprep.subr.bf16.mxu1 %v5554_v49  ;;  %v5644_v49 = vld [vmem:[#allocation7 + $0x524] ss:$24 sps:$4 sm:$0xff]  }
 0x340   :  { %2596 = vmatpush1.bf16.msra.mxu0 %v5549_v2  ;;  %v5639_v2 = vld [vmem:[#allocation7 + $0x220] ss:$24 sps:$4 sm:$0xff]  }
 0x341   :  { %2637 = vmatpush1.bf16.msra.mxu1 %v5552_v6  ;;  %2597 = vmatprep.subr.bf16.mxu0 %v5557_v13  ;;  %v5642_v6 = vld [vmem:[#allocation7 + $0x520] ss:$24 sps:$4 sm:$0xff]   ;;  %v5647_v13 = vld [vmem:[#allocation7 + $0x254] ss:$24 sps:$4 sm:$0xff]  }
 0x342   :  { %2638 = vmatprep.subr.bf16.mxu1 %v5560_v14  ;;  %v5650_v14 = vld [vmem:[#allocation7 + $0x554] ss:$24 sps:$4 sm:$0xff]  }
 0x344   :  { %2598 = vmatpush1.bf16.msra.mxu0 %v5555_v34  ;;  %v5645_v34 = vld [vmem:[#allocation7 + $0x250] ss:$24 sps:$4 sm:$0xff]  }
 0x345   :  { %2639 = vmatpush1.bf16.msra.mxu1 %v5558_v18  ;;  %2599 = vmatprep.subr.bf16.mxu0 %v5563_v30  ;;  %v5648_v18 = vld [vmem:[#allocation7 + $0x550] ss:$24 sps:$4 sm:$0xff]   ;;  %v5653_v30 = vld [vmem:[#allocation7 + $0x284] ss:$24 sps:$4 sm:$0xff]  }
 0x346   :  { %2640 = vmatprep.subr.bf16.mxu1 %v5566_v19  ;;  %v5656_v19 = vld [vmem:[#allocation7 + $0x584] ss:$24 sps:$4 sm:$0xff]  }
 0x348   :  { %2600 = vmatpush1.bf16.msra.mxu0 %v5561_v21  ;;  %v6288_v21 = vmov 1983009808  }
 0x349   :  { %2641 = vmatpush1.bf16.msra.mxu1 %v5564_v22  ;;  %2601 = vmatprep.subr.bf16.mxu0 %v5569_v23  ;;  %v2780_v22 = vunpack.c.l.s4 %v6288_v21  ;;  %v2782_v23 = vlaneseq  ;;  %v5717_v21 = vld [vmem:[#allocation7 + $0x790] ss:$24 sps:$4 sm:$0xff]  }
 0x34a   :  { %2642 = vmatprep.subr.bf16.mxu1 %v5572_v26  ;;  %v5651_v26 = vld [vmem:[#allocation7 + $0x280] ss:$24 sps:$4 sm:$0xff]  }
 0x34c   :  { %2602 = vmatpush1.bf16.msra.mxu0 %v5567_v31  ;;  %v5654_v31 = vld [vmem:[#allocation7 + $0x580] ss:$24 sps:$4 sm:$0xff]  }
 0x34d   :  { %2643 = vmatpush1.bf16.msra.mxu1 %v5570_v32  ;;  %2653 = vmatprep.subr.bf16.mxu0 %v5575_v33  ;;  %v5659_v32 = vld [vmem:[#allocation7 + $0x2b4] ss:$24 sps:$4 sm:$0xff]  }
 0x34e   :  { %2694 = vmatprep.subr.bf16.mxu1 %v5578_v35  ;;  %v5662_v33 = vld [vmem:[#allocation7 + $0x5b4] ss:$24 sps:$4 sm:$0xff]   ;;  %v2781_v35 = vunpack.c.0.s8 %v2780_v22  ;;  %v5720_v22 = vld [vmem:[#allocation5 + $0x180] ss:$24 sps:$4 sm:$0xff]  }
 0x34f   :  { %2604 = vmatmul.mubr.bf16.vlgmr.msra.gmra.mrb[8].mxu0 %v6522_v20 }
 0x350   :  { %2645 = vmatmul.mubr.bf16.vlgmr.msra.gmra.mrb[8].mxu1 %v6534_v25  ;;  %2654 = vmatpush1.bf16.msra.mxu0 %v5573_v36  ;;  %v6544_v36 = vshrl.u32 %v2782_v23, 7  ;;  %v5725_v23 = vld [vmem:[#allocation7 + $0x7c4] ss:$24 sps:$4 sm:$0xff]  }
 0x351   :  { %2685 = vmatprep.mubr.bf16.mxu0 %v6516_v28  ;;  %2695 = vmatpush1.bf16.msra.mxu1 %v5576_v8  ;;  %v5594_v28 = vld [vmem:[#allocation7 + $0x3a0] ss:$24 sps:$4 sm:$0xff]   ;;  %v5657_v8 = vld [vmem:[#allocation7 + $0x2b0] ss:$24 sps:$4 sm:$0xff]  }
 0x352   :  { %2726 = vmatprep.mubr.bf16.mxu1 %v6518_v17  ;;  %2655 = vmatprep.subr.bf16.mxu0 %v5581_v37  ;;  %v5597_v17 = vld [vmem:[#allocation7 + $0xd0] ss:$24 sps:$4 sm:$0xff]  }
 0x353   :  { %2696 = vmatprep.subr.bf16.mxu1 %v5584_v24  ;;  %v5660_v37 = vld [vmem:[#allocation7 + $0x5b0] ss:$24 sps:$4 sm:$0xff]   ;;  %v5665_v24 = vld [vmem:[#allocation7 + $0x2e4] ss:$24 sps:$4 sm:$0xff]  }
 0x354   :  { %2656 = vmatpush1.bf16.msra.mxu0 %v5579_v38  ;;  %v5668_v38 = vld [vmem:[#allocation7 + $0x5e4] ss:$24 sps:$4 sm:$0xff]  }
 0x355   :  { %2697 = vmatpush1.bf16.msra.mxu1 %v5582_v39  ;;  %2657 = vmatprep.subr.bf16.mxu0 %v5587_v40  ;;  %v6547_v39 = vsub.s32 %v2781_v35, %v6544_v36  ;;  %v5663_v40 = vld [vmem:[#allocation7 + $0x2e0] ss:$24 sps:$4 sm:$0xff]   ;;  %v5734_v35 = vld [vmem:[#allocation5 + $0x1e4] ss:$24 sps:$4 sm:$0xff]  }
 0x356   :  { %2698 = vmatprep.subr.bf16.mxu1 %v5590_v41  ;;  %v5666_v41 = vld [vmem:[#allocation7 + $0x5e0] ss:$24 sps:$4 sm:$0xff]  }
 0x358   :  { %2658 = vmatpush1.bf16.msra.mxu0 %v5585_v7  ;;  %v5671_v7 = vld [vmem:[#allocation7 + $0x614] ss:$24 sps:$4 sm:$0xff]  }
 0x359   :  { %2699 = vmatpush1.bf16.msra.mxu1 %v5588_v15  ;;  %2659 = vmatprep.subr.bf16.mxu0 %v5593_v27  ;;  %v5674_v15 = vld [vmem:[#allocation5 + $0x4] ss:$24 sps:$4 sm:$0xff]   ;;  %v6549_v27 = vld [vmem:[#allocation2 + $0x30] sm:$0xff] }
 0x35a   :  { %2700 = vmatprep.subr.bf16.mxu1 %v5596_v42  ;;  %v6553_v42 = vrot.slane %v6549_v27, %v6547_v39 }
 0x35c   :  { %2660 = vmatpush1.bf16.msra.mxu0 %v5591_v43  ;;  %v5669_v43 = vld [vmem:[#allocation7 + $0x610] ss:$24 sps:$4 sm:$0xff]  }
 0x35d   :  { %2701 = vmatpush1.bf16.msra.mxu1 %v5594_v28  ;;  %2661 = vmatprep.subr.bf16.mxu0 %v5599_v9  ;;  %v5672_v28 = vld [vmem:[#allocation5] ss:$24 sps:$4 sm:$0xff]   ;;  %v5677_v9 = vld [vmem:[#allocation7 + $0x644] ss:$24 sps:$4 sm:$0xff]  }
 0x35e   :  { %2702 = vmatprep.subr.bf16.mxu1 %v5602_v44  ;;  %v5680_v44 = vld [vmem:[#allocation5 + $0x34] ss:$24 sps:$4 sm:$0xff]  }
 0x360   :  { %2662 = vmatpush1.bf16.msra.mxu0 %v5597_v17  ;;  %v6558_v17 = vcombine.high %v6553_v42, %v6553_v42 }
 0x361   :  { %2703 = vmatpush1.bf16.msra.mxu1 %v5600_v29  ;;  %2663 = vmatprep.subr.bf16.mxu0 %v5605_v45  ;;  %v5675_v29 = vld [vmem:[#allocation7 + $0x640] ss:$24 sps:$4 sm:$0xff]   ;;  %v5678_v45 = vld [vmem:[#allocation5 + $0x30] ss:$24 sps:$4 sm:$0xff]  }
 0x362   :  { %2704 = vmatprep.subr.bf16.mxu1 %v5608_v46  ;;  %v5683_v46 = vld [vmem:[#allocation7 + $0x674] ss:$24 sps:$4 sm:$0xff]  }
 0x364   :  { %2664 = vmatpush1.bf16.msra.mxu0 %v5603_v47  ;;  %v5686_v47 = vld [vmem:[#allocation5 + $0x64] ss:$24 sps:$4 sm:$0xff]  }
 0x365   :  { %2705 = vmatpush1.bf16.msra.mxu1 %v5606_v3  ;;  %2665 = vmatprep.subr.bf16.mxu0 %v5611_v50  ;;  %v5684_v3 = vld [vmem:[#allocation5 + $0x60] ss:$24 sps:$4 sm:$0xff]   ;;  %v5689_v50 = vld [vmem:[#allocation7 + $0x6a4] ss:$24 sps:$4 sm:$0xff]  }
 0x366   :  { %2706 = vmatprep.subr.bf16.mxu1 %v5614_v4  ;;  %v5687_v4 = vld [vmem:[#allocation7 + $0x6a0] ss:$24 sps:$4 sm:$0xff]  }
 0x368   :  { %2666 = vmatpush1.bf16.msra.mxu0 %v5609_v51  ;;  %v5695_v51 = vld [vmem:[#allocation7 + $0x6d4] ss:$24 sps:$4 sm:$0xff]  }
 0x369   :  { %2707 = vmatpush1.bf16.msra.mxu1 %v5612_v11  ;;  %2667 = vmatprep.subr.bf16.mxu0 %v5617_v52  ;;  %v5698_v11 = vld [vmem:[#allocation5 + $0xc4] ss:$24 sps:$4 sm:$0xff]   ;;  %v5693_v52 = vld [vmem:[#allocation7 + $0x6d0] ss:$24 sps:$4 sm:$0xff]  }
 0x36a   :  { %2708 = vmatprep.subr.bf16.mxu1 %v5620_v53  ;;  %v5696_v53 = vld [vmem:[#allocation5 + $0xc0] ss:$24 sps:$4 sm:$0xff]  }
 0x36c   :  { %2668 = vmatpush1.bf16.msra.mxu0 %v5615_v54  ;;  %v5701_v54 = vld [vmem:[#allocation7 + $0x704] ss:$24 sps:$4 sm:$0xff]  }
 0x36d   :  { %2709 = vmatpush1.bf16.msra.mxu1 %v5618_v5  ;;  %2669 = vmatprep.subr.bf16.mxu0 %v5623_v55  ;;  %v5704_v5 = vld [vmem:[#allocation5 + $0xf4] ss:$24 sps:$4 sm:$0xff]   ;;  %v5699_v55 = vld [vmem:[#allocation7 + $0x700] ss:$24 sps:$4 sm:$0xff]  }
 0x36e   :  { %2710 = vmatprep.subr.bf16.mxu1 %v5626_v56  ;;  %v5702_v56 = vld [vmem:[#allocation5 + $0xf0] ss:$24 sps:$4 sm:$0xff]  }
 0x370   :  { %2670 = vmatpush1.bf16.msra.mxu0 %v5621_v12  ;;  %v5707_v12 = vld [vmem:[#allocation7 + $0x734] ss:$24 sps:$4 sm:$0xff]  }
 0x371   :  { %2711 = vmatpush1.bf16.msra.mxu1 %v5624_v57  ;;  %2671 = vmatprep.subr.bf16.mxu0 %v5629_v58 }
 0x372   :  { %2712 = vmatprep.subr.bf16.mxu1 %v5632_v62  ;;  %v5710_v62 = vld [vmem:[#allocation5 + $0x124] ss:$24 sps:$4 sm:$0xff]  }
 0x374   :  { %2672 = vmatpush1.bf16.msra.mxu0 %v5627_v59 }
 0x375   :  { %2713 = vmatpush1.bf16.msra.mxu1 %v5630_v60  ;;  %2673 = vmatprep.subr.bf16.mxu0 %v5635_v48 }
 0x376   :  { %2714 = vmatprep.subr.bf16.mxu1 %v5638_v61 }
 0x378   :  { %2674 = vmatpush1.bf16.msra.mxu0 %v5633_v63 }
 0x379   :  { %2715 = vmatpush1.bf16.msra.mxu1 %v5636_v0  ;;  %2675 = vmatprep.subr.bf16.mxu0 %v5641_v1  ;;  %v5705_v1 = vld [vmem:[#allocation7 + $0x730] ss:$24 sps:$4 sm:$0xff]  }
 0x37a   :  { %2716 = vmatprep.subr.bf16.mxu1 %v5644_v49 }
 0x37c   :  { %2676 = vmatpush1.bf16.msra.mxu0 %v5639_v2 }
 0x37d   :  { %2717 = vmatpush1.bf16.msra.mxu1 %v5642_v6  ;;  %2677 = vmatprep.subr.bf16.mxu0 %v5647_v13  ;;  %v5708_v6 = vld [vmem:[#allocation5 + $0x120] ss:$24 sps:$4 sm:$0xff]   ;;  %v5713_v13 = vld [vmem:[#allocation7 + $0x764] ss:$24 sps:$4 sm:$0xff]  }
 0x37e   :  { %2718 = vmatprep.subr.bf16.mxu1 %v5650_v14  ;;  %v5716_v14 = vld [vmem:[#allocation5 + $0x154] ss:$24 sps:$4 sm:$0xff]  }
 0x380   :  { %2678 = vmatpush1.bf16.msra.mxu0 %v5645_v34  ;;  %v5711_v34 = vld [vmem:[#allocation7 + $0x760] ss:$24 sps:$4 sm:$0xff]  }
 0x381   :  { %2719 = vmatpush1.bf16.msra.mxu1 %v5648_v18  ;;  %2679 = vmatprep.subr.bf16.mxu0 %v5653_v30  ;;  %v5714_v18 = vld [vmem:[#allocation5 + $0x150] ss:$24 sps:$4 sm:$0xff]   ;;  %v5719_v30 = vld [vmem:[#allocation7 + $0x794] ss:$24 sps:$4 sm:$0xff]  }
 0x382   :  { %2720 = vmatprep.subr.bf16.mxu1 %v5656_v19  ;;  %v5722_v19 = vld [vmem:[#allocation5 + $0x184] ss:$24 sps:$4 sm:$0xff]  }
 0x384   :  { %2680 = vmatpush1.bf16.msra.mxu0 %v5651_v26  ;;  %v5728_v26 = vld [vmem:[#allocation5 + $0x1b4] ss:$24 sps:$4 sm:$0xff]  }
 0x385   :  { %2721 = vmatpush1.bf16.msra.mxu1 %v5654_v31  ;;  %2681 = vmatprep.subr.bf16.mxu0 %v5659_v32  ;;  %v5723_v31 = vld [vmem:[#allocation7 + $0x7c0] ss:$24 sps:$4 sm:$0xff]   ;;  %v5726_v32 = vld [vmem:[#allocation5 + $0x1b0] ss:$24 sps:$4 sm:$0xff]  }
 0x386   :  { %2722 = vmatprep.subr.bf16.mxu1 %v5662_v33  ;;  %v5731_v33 = vld [vmem:[#allocation7 + $0x7f4] ss:$24 sps:$4 sm:$0xff]  }
 0x388   :  { %2682 = vmatpush1.bf16.msra.mxu0 %v5657_v8  ;;  %v5729_v8 = vld [vmem:[#allocation7 + $0x7f0] ss:$24 sps:$4 sm:$0xff]  }
 0x389   :  { %2723 = vmatpush1.bf16.msra.mxu1 %v5660_v37  ;;  %2683 = vmatprep.subr.bf16.mxu0 %v5665_v24  ;;  %v5732_v37 = vld [vmem:[#allocation5 + $0x1e0] ss:$24 sps:$4 sm:$0xff]   ;;  %v5737_v24 = vld [vmem:[#allocation7 + $0x824] ss:$24 sps:$4 sm:$0xff]  }
 0x38a   :  { %2724 = vmatprep.subr.bf16.mxu1 %v5668_v38  ;;  %v5740_v38 = vld [vmem:[#allocation5 + $0x214] ss:$24 sps:$4 sm:$0xff]  }
 0x38c   :  { %2684 = vmatpush1.bf16.msra.mxu0 %v5663_v40  ;;  %v5735_v40 = vld [vmem:[#allocation7 + $0x820] ss:$24 sps:$4 sm:$0xff]  }
 0x38d   :  { %2725 = vmatpush1.bf16.msra.mxu1 %v5666_v41  ;;  %2735 = vmatprep.subr.bf16.mxu0 %v5671_v7  ;;  %v5738_v41 = vld [vmem:[#allocation5 + $0x210] ss:$24 sps:$4 sm:$0xff]   ;;  %v5743_v7 = vld [vmem:[#allocation7 + $0x854] ss:$24 sps:$4 sm:$0xff]  }
 0x38e   :  { %4249 = vmatprep.subr.bf16.mxu1 %v5674_v15  ;;  %v5746_v15 = vld [vmem:[#allocation5 + $0x244] ss:$24 sps:$4 sm:$0xff]  }
 0x38f   :  { %2686 = vmatmul.mubr.bf16.vlgmr.msra.gmra.mrb[12].mxu0 %v6520_v10  ;;  %v5681_v10 = vld [vmem:[#allocation7 + $0x670] ss:$24 sps:$4 sm:$0xff]  }
 0x390   :  { %2727 = vmatmul.mubr.bf16.vlgmr.msra.gmra.mrb[12].mxu1 %v6522_v20  ;;  %2736 = vmatpush1.bf16.msra.mxu0 %v5669_v43  ;;  %v5692_v20 = vld [vmem:[#allocation5 + $0x94] ss:$24 sps:$4 sm:$0xff]   ;;  %v5741_v43 = vld [vmem:[#allocation7 + $0x850] ss:$24 sps:$4 sm:$0xff]  }
 0x391   :  { %2767 = vmatprep.mubr.bf16.mxu0 %v6528_v16  ;;  %4250 = vmatpush1.bf16.msra.mxu1 %v5672_v28  ;;  %v5690_v16 = vld [vmem:[#allocation5 + $0x90] ss:$24 sps:$4 sm:$0xff]   ;;  %v5744_v28 = vld [vmem:[#allocation5 + $0x240] ss:$24 sps:$4 sm:$0xff]  }
 0x392   :  { %2737 = vmatprep.subr.bf16.mxu0 %v5677_v9  ;;  %4251 = vmatprep.subr.bf16.mxu1 %v5680_v44  ;;  %v5749_v9 = vld [vmem:[#allocation7 + $0x884] ss:$24 sps:$4 sm:$0xff]   ;;  %v5752_v44 = vld [vmem:[#allocation5 + $0x274] ss:$24 sps:$4 sm:$0xff]  }
 0x393   :  { %4281 = vmatprep.mubr.bf16.mxu1 %v6558_v17 }
 0x394   :  { %2738 = vmatpush1.bf16.msra.mxu0 %v5675_v29  ;;  %v5747_v29 = vld [vmem:[#allocation7 + $0x880] ss:$24 sps:$4 sm:$0xff]  }
 0x395   :  { %4252 = vmatpush1.bf16.msra.mxu1 %v5678_v45  ;;  %2739 = vmatprep.subr.bf16.mxu0 %v5683_v46  ;;  %v5750_v45 = vld [vmem:[#allocation5 + $0x270] ss:$24 sps:$4 sm:$0xff]   ;;  %v5755_v46 = vld [vmem:[#allocation7 + $0x8b4] ss:$24 sps:$4 sm:$0xff]  }
 0x396   :  { %4253 = vmatprep.subr.bf16.mxu1 %v5686_v47  ;;  %v5758_v47 = vld [vmem:[#allocation5 + $0x2a4] ss:$24 sps:$4 sm:$0xff]  }
 0x398   :  { %2740 = vmatpush1.bf16.msra.mxu0 %v5681_v10  ;;  %v5753_v10 = vld [vmem:[#allocation7 + $0x8b0] ss:$24 sps:$4 sm:$0xff]  }
 0x399   :  { %4254 = vmatpush1.bf16.msra.mxu1 %v5684_v3  ;;  %2741 = vmatprep.subr.bf16.mxu0 %v5689_v50  ;;  %v5756_v3 = vld [vmem:[#allocation5 + $0x2a0] ss:$24 sps:$4 sm:$0xff]   ;;  %v5761_v50 = vld [vmem:[#allocation7 + $0x8e4] ss:$24 sps:$4 sm:$0xff]  }
 0x39a   :  { %4255 = vmatprep.subr.bf16.mxu1 %v5692_v20  ;;  %v5764_v20 = vld [vmem:[#allocation5 + $0x2d4] ss:$24 sps:$4 sm:$0xff]  }
 0x39c   :  { %2742 = vmatpush1.bf16.msra.mxu0 %v5687_v4  ;;  %v2778_v4 = vcombine.high %v6549_v27, %v6549_v27  ;;  %v5776_v27 = vld [vmem:[#allocation5 + $0x634] ss:$24 sps:$4 sm:$0xff]  }
 0x39d   :  { %4256 = vmatpush1.bf16.msra.mxu1 %v5690_v16  ;;  %2743 = vmatprep.subr.bf16.mxu0 %v5695_v51  ;;  %v5759_v16 = vld [vmem:[#allocation7 + $0x8e0] ss:$24 sps:$4 sm:$0xff]   ;;  %v5762_v51 = vld [vmem:[#allocation5 + $0x2d0] ss:$24 sps:$4 sm:$0xff]  }
 0x39e   :  { %4257 = vmatprep.subr.bf16.mxu1 %v5698_v11  ;;  %v5767_v11 = vld [vmem:[#allocation5 + $0x304] ss:$24 sps:$4 sm:$0xff]  }
 0x3a0   :  { %2744 = vmatpush1.bf16.msra.mxu0 %v5693_v52  ;;  %v5770_v52 = vld [vmem:[#allocation5 + $0x604] ss:$24 sps:$4 sm:$0xff]  }
 0x3a1   :  { %4258 = vmatpush1.bf16.msra.mxu1 %v5696_v53  ;;  %2745 = vmatprep.subr.bf16.mxu0 %v5701_v54  ;;  %v6570_v53 = vrot.slane %v2778_v4, %v6547_v39  ;;  %v6572_v54 = vld.sshfl [vmem:[#allocation2 + $0x38] sm:$0x33 pattern:$0x76325410]  ;;  %v5833_v4 = vld [vmem:[#allocation5 + $0x514] ss:$24 sps:$4 sm:$0xff]  }
 0x3a2   :  { %v2441_v57 = vpop.f32.mrb[0].mxu0  ;;  %v2482_v58 = vpop.f32.mrb[0].mxu1  ;;  %4259 = vmatprep.subr.bf16.mxu1 %v5704_v5  ;;  %v5765_v5 = vld [vmem:[#allocation5 + $0x300] ss:$24 sps:$4 sm:$0xff]   ;;  %v6581_v39 = vcombine.high %v6572_v54, %v6572_v54 }
 0x3a3   :  { %v6563_v59 = vadd.f32 %v2482_v58, %v2441_v57  ;;  %v2443_v60 = vpop.f32.mrb[1].mxu0  ;;  %v2484_v48 = vpop.f32.mrb[1].mxu1  ;;  %v5771_v57 = vld [vmem:[#allocation5 + $0x330] ss:$24 sps:$4 sm:$0xff]  }
 0x3a4   :  { %v6565_v61 = vadd.f32 %v2484_v48, %v2443_v60  ;;  %2746 = vmatpush1.bf16.msra.mxu0 %v5699_v55  ;;  %v2445_v63 = vpop.f32.mrb[2].mxu0  ;;  %v2486_v0 = vpop.f32.mrb[2].mxu1  ;;  %v5768_v55 = vld [vmem:[#allocation5 + $0x600] ss:$24 sps:$4 sm:$0xff]   ;;  %v5774_v58 = vld [vmem:[#allocation5 + $0x630] ss:$24 sps:$4 sm:$0xff]  }
 0x3a5   :  { %4260 = vmatpush1.bf16.msra.mxu1 %v5702_v56  ;;  %v2446_v49 = vpop.f32.mrb[3].mxu0  ;;  %v2487_v2 = vpop.f32.mrb[3].mxu1  ;;  %2747 = vmatprep.subr.bf16.mxu0 %v5707_v12  ;;  %v5773_v56 = vld [vmem:[#allocation5 + $0x334] ss:$24 sps:$4 sm:$0xff]   ;;  %v6576_v12 = vcombine.high %v6570_v53, %v6570_v53  ;;  %v5782_v60 = vld [vmem:[#allocation5 + $0x664] ss:$24 sps:$4 sm:$0xff]  }
 0x3a6   :  { %4261 = vmatprep.subr.bf16.mxu1 %v5710_v62  ;;  %v5779_v62 = vld [vmem:[#allocation5 + $0x364] ss:$24 sps:$4 sm:$0xff]   ;;  %v5780_v48 = vld [vmem:[#allocation5 + $0x660] ss:$24 sps:$4 sm:$0xff]   ;;  %v5785_v63 = vld [vmem:[#allocation5 + $0x394] ss:$24 sps:$4 sm:$0xff]  }
 0x3a7   :  { %v5788_v0 = vld [vmem:[#allocation5 + $0x694] ss:$24 sps:$4 sm:$0xff]   ;;  %v5786_v49 = vld [vmem:[#allocation5 + $0x690] ss:$24 sps:$4 sm:$0xff]   ;;  %v5791_v2 = vld [vmem:[#allocation5 + $0x3c4] ss:$24 sps:$4 sm:$0xff]  }
 0x3a8   :  { %2748 = vmatpush1.bf16.msra.mxu0 %v5705_v1  ;;  %v5783_v1 = vld [vmem:[#allocation5 + $0x390] ss:$24 sps:$4 sm:$0xff]  }
 0x3a9   :  { %4262 = vmatpush1.bf16.msra.mxu1 %v5708_v6  ;;  %2749 = vmatprep.subr.bf16.mxu0 %v5713_v13  ;;  %v5794_v6 = vld [vmem:[#allocation5 + $0x6c4] ss:$24 sps:$4 sm:$0xff]   ;;  %v5789_v13 = vld [vmem:[#allocation5 + $0x3c0] ss:$24 sps:$4 sm:$0xff]  }
 0x3aa   :  { %4263 = vmatprep.subr.bf16.mxu1 %v5716_v14  ;;  %v5792_v14 = vld [vmem:[#allocation5 + $0x6c0] ss:$24 sps:$4 sm:$0xff]  }
 0x3ac   :  { %2750 = vmatpush1.bf16.msra.mxu0 %v5711_v34  ;;  %v5797_v34 = vld [vmem:[#allocation5 + $0x3f4] ss:$24 sps:$4 sm:$0xff]  }
 0x3ad   :  { %4264 = vmatpush1.bf16.msra.mxu1 %v5714_v18  ;;  %2751 = vmatprep.subr.bf16.mxu0 %v5719_v30  ;;  %v5800_v18 = vld [vmem:[#allocation5 + $0x6f4] ss:$24 sps:$4 sm:$0xff]   ;;  %v5795_v30 = vld [vmem:[#allocation5 + $0x3f0] ss:$24 sps:$4 sm:$0xff]  }
 0x3ae   :  { %4265 = vmatprep.subr.bf16.mxu1 %v5722_v19  ;;  %v5798_v19 = vld [vmem:[#allocation5 + $0x6f0] ss:$24 sps:$4 sm:$0xff]  }
 0x3b0   :  { %2752 = vmatpush1.bf16.msra.mxu0 %v5717_v21  ;;  %v5803_v21 = vld [vmem:[#allocation5 + $0x424] ss:$24 sps:$4 sm:$0xff]  }
 0x3b1   :  { %4266 = vmatpush1.bf16.msra.mxu1 %v5720_v22  ;;  %2753 = vmatprep.subr.bf16.mxu0 %v5725_v23 }
 0x3b2   :  { %4267 = vmatprep.subr.bf16.mxu1 %v5728_v26  ;;  %v5806_v26 = vld [vmem:[#allocation5 + $0x724] ss:$24 sps:$4 sm:$0xff]  }
 0x3b4   :  { %2754 = vmatpush1.bf16.msra.mxu0 %v5723_v31 }
 0x3b5   :  { %4268 = vmatpush1.bf16.msra.mxu1 %v5726_v32  ;;  %2755 = vmatprep.subr.bf16.mxu0 %v5731_v33 }
 0x3b6   :  { %4269 = vmatprep.subr.bf16.mxu1 %v5734_v35 }
 0x3b8   :  { %2756 = vmatpush1.bf16.msra.mxu0 %v5729_v8 }
 0x3b9   :  { %4270 = vmatpush1.bf16.msra.mxu1 %v5732_v37  ;;  %2757 = vmatprep.subr.bf16.mxu0 %v5737_v24  ;;  %v5801_v24 = vld [vmem:[#allocation5 + $0x420] ss:$24 sps:$4 sm:$0xff]  }
 0x3ba   :  { %4271 = vmatprep.subr.bf16.mxu1 %v5740_v38 }
 0x3bc   :  { %2758 = vmatpush1.bf16.msra.mxu0 %v5735_v40 }
 0x3bd   :  { %4272 = vmatpush1.bf16.msra.mxu1 %v5738_v41  ;;  %2759 = vmatprep.subr.bf16.mxu0 %v5743_v7  ;;  %v5804_v41 = vld [vmem:[#allocation5 + $0x720] ss:$24 sps:$4 sm:$0xff]   ;;  %v5809_v7 = vld [vmem:[#allocation5 + $0x454] ss:$24 sps:$4 sm:$0xff]  }
 0x3be   :  { %4273 = vmatprep.subr.bf16.mxu1 %v5746_v15  ;;  %v5812_v15 = vld [vmem:[#allocation5 + $0x754] ss:$24 sps:$4 sm:$0xff]  }
 0x3c0   :  { %2760 = vmatpush1.bf16.msra.mxu0 %v5741_v43  ;;  %v5810_v43 = vld [vmem:[#allocation5 + $0x750] ss:$24 sps:$4 sm:$0xff]  }
 0x3c1   :  { %4274 = vmatpush1.bf16.msra.mxu1 %v5744_v28  ;;  %2761 = vmatprep.subr.bf16.mxu0 %v5749_v9  ;;  %v5815_v28 = vld [vmem:[#allocation5 + $0x484] ss:$24 sps:$4 sm:$0xff]   ;;  %v5813_v9 = vld [vmem:[#allocation5 + $0x480] ss:$24 sps:$4 sm:$0xff]  }
 0x3c2   :  { %4275 = vmatprep.subr.bf16.mxu1 %v5752_v44  ;;  %v5816_v44 = vld [vmem:[#allocation5 + $0x780] ss:$24 sps:$4 sm:$0xff]  }
 0x3c4   :  { %2762 = vmatpush1.bf16.msra.mxu0 %v5747_v29  ;;  %v5821_v29 = vld [vmem:[#allocation5 + $0x4b4] ss:$24 sps:$4 sm:$0xff]  }
 0x3c5   :  { %4276 = vmatpush1.bf16.msra.mxu1 %v5750_v45  ;;  %2763 = vmatprep.subr.bf16.mxu0 %v5755_v46  ;;  %v5824_v45 = vld [vmem:[#allocation5 + $0x7b4] ss:$24 sps:$4 sm:$0xff]   ;;  %v5819_v46 = vld [vmem:[#allocation5 + $0x4b0] ss:$24 sps:$4 sm:$0xff]  }
 0x3c6   :  { %4277 = vmatprep.subr.bf16.mxu1 %v5758_v47  ;;  %v5822_v47 = vld [vmem:[#allocation5 + $0x7b0] ss:$24 sps:$4 sm:$0xff]  }
 0x3c8   :  { %2764 = vmatpush1.bf16.msra.mxu0 %v5753_v10  ;;  %v5827_v10 = vld [vmem:[#allocation5 + $0x4e4] ss:$24 sps:$4 sm:$0xff]  }
 0x3c9   :  { %4278 = vmatpush1.bf16.msra.mxu1 %v5756_v3  ;;  %2765 = vmatprep.subr.bf16.mxu0 %v5761_v50  ;;  %v5830_v3 = vld [vmem:[#allocation5 + $0x7e4] ss:$24 sps:$4 sm:$0xff]   ;;  %v5825_v50 = vld [vmem:[#allocation5 + $0x4e0] ss:$24 sps:$4 sm:$0xff]  }
 0x3ca   :  { %4279 = vmatprep.subr.bf16.mxu1 %v5764_v20  ;;  %v5828_v20 = vld [vmem:[#allocation5 + $0x7e0] ss:$24 sps:$4 sm:$0xff]  }
 0x3cc   :  { %2766 = vmatpush1.bf16.msra.mxu0 %v5759_v16  ;;  %v5836_v16 = vld [vmem:[#allocation5 + $0x814] ss:$24 sps:$4 sm:$0xff]  }
 0x3cd   :  { %4280 = vmatpush1.bf16.msra.mxu1 %v5762_v51  ;;  %4290 = vmatprep.subr.bf16.mxu0 %v5767_v11  ;;  %v5831_v51 = vld [vmem:[#allocation5 + $0x510] ss:$24 sps:$4 sm:$0xff]  }
 0x3ce   :  { %4331 = vmatprep.subr.bf16.mxu1 %v5770_v52  ;;  %v5834_v11 = vld [vmem:[#allocation5 + $0x810] ss:$24 sps:$4 sm:$0xff]   ;;  %v5839_v52 = vld [vmem:[#allocation5 + $0x544] ss:$24 sps:$4 sm:$0xff]  }
 0x3cf   :  { %2768 = vmatmul.mubr.bf16.vlgmr.msra.gmra.mrb[16].mxu0 %v6534_v25  ;;  %v5777_v25 = vld [vmem:[#allocation5 + $0x360] ss:$24 sps:$4 sm:$0xff]  }
 0x3d0   :  { %4282 = vmatmul.mubr.bf16.vlgmr.msra.gmra.mrb[16].mxu1 %v6553_v42  ;;  %4291 = vmatpush1.bf16.msra.mxu0 %v5765_v5  ;;  %v5842_v5 = vld [vmem:[#allocation5 + $0x844] ss:$24 sps:$4 sm:$0xff]  }
 0x3d1   :  { %4332 = vmatpush1.bf16.msra.mxu1 %v5768_v55  ;;  %4292 = vmatprep.subr.bf16.mxu0 %v5773_v56  ;;  %v5837_v55 = vld [vmem:[#allocation5 + $0x540] ss:$24 sps:$4 sm:$0xff]  }
 0x3d2   :  { %4333 = vmatprep.subr.bf16.mxu1 %v5776_v27  ;;  %4322 = vmatprep.mubr.bf16.mxu0 %v6576_v12  ;;  %v5840_v56 = vld [vmem:[#allocation5 + $0x840] ss:$24 sps:$4 sm:$0xff]   ;;  %v5845_v27 = vld [vmem:[#allocation5 + $0x574] ss:$24 sps:$4 sm:$0xff]  }
 0x3d3   :  { %4363 = vmatprep.mubr.bf16.mxu1 %v6581_v39 }
 0x3d4   :  { %4293 = vmatpush1.bf16.msra.mxu0 %v5771_v57  ;;  %v5848_v57 = vld [vmem:[#allocation5 + $0x874] ss:$24 sps:$4 sm:$0xff]  }
 0x3d5   :  { %4334 = vmatpush1.bf16.msra.mxu1 %v5774_v58  ;;  %4294 = vmatprep.subr.bf16.mxu0 %v5779_v62  ;;  %v5843_v58 = vld [vmem:[#allocation5 + $0x570] ss:$24 sps:$4 sm:$0xff]  }
 0x3d6   :  { %4335 = vmatprep.subr.bf16.mxu1 %v5782_v60  ;;  %v5846_v62 = vld [vmem:[#allocation5 + $0x870] ss:$24 sps:$4 sm:$0xff]   ;;  %v5851_v60 = vld [vmem:[#allocation5 + $0x5a4] ss:$24 sps:$4 sm:$0xff]  }
 0x3d8   :  { %4295 = vmatpush1.bf16.msra.mxu0 %v5777_v25  ;;  %v5854_v25 = vld [vmem:[#allocation5 + $0x8a4] ss:$24 sps:$4 sm:$0xff]  }
 0x3d9   :  { %4336 = vmatpush1.bf16.msra.mxu1 %v5780_v48  ;;  %4296 = vmatprep.subr.bf16.mxu0 %v5785_v63  ;;  %v5849_v48 = vld [vmem:[#allocation5 + $0x5a0] ss:$24 sps:$4 sm:$0xff]  }
 0x3da   :  { %4337 = vmatprep.subr.bf16.mxu1 %v5788_v0  ;;  %v5852_v63 = vld [vmem:[#allocation5 + $0x8a0] ss:$24 sps:$4 sm:$0xff]   ;;  %v5857_v0 = vld [vmem:[#allocation5 + $0x5d4] ss:$24 sps:$4 sm:$0xff]  }
 0x3dc   :  { %4297 = vmatpush1.bf16.msra.mxu0 %v5783_v1  ;;  %v5860_v1 = vld [vmem:[#allocation5 + $0x8d4] ss:$24 sps:$4 sm:$0xff]  }
 0x3dd   :  { %4338 = vmatpush1.bf16.msra.mxu1 %v5786_v49  ;;  %4298 = vmatprep.subr.bf16.mxu0 %v5791_v2  ;;  %v5855_v49 = vld [vmem:[#allocation5 + $0x5d0] ss:$24 sps:$4 sm:$0xff]  }
 0x3de   :  { %4339 = vmatprep.subr.bf16.mxu1 %v5794_v6  ;;  %v5858_v2 = vld [vmem:[#allocation5 + $0x8d0] ss:$24 sps:$4 sm:$0xff]   ;;  %v5864_v6 = vld [vmem:[#allocation5 + $0xc] ss:$24 sps:$4 sm:$0xff]  }
 0x3e0   :  { %4299 = vmatpush1.bf16.msra.mxu0 %v5789_v13  ;;  %v5867_v13 = vld [vmem:[#allocation5 + $0x30c] ss:$24 sps:$4 sm:$0xff]  }
 0x3e1   :  { %4340 = vmatpush1.bf16.msra.mxu1 %v5792_v14  ;;  %4300 = vmatprep.subr.bf16.mxu0 %v5797_v34  ;;  %v5862_v14 = vld [vmem:[#allocation5 + $0x8] ss:$24 sps:$4 sm:$0xff]  }
 0x3e2   :  { %v2523_v22 = vpop.f32.mrb[4].mxu0  ;;  %v6586_v23 = vpop.f32.mrb[4].mxu1  ;;  %4341 = vmatprep.subr.bf16.mxu1 %v5800_v18  ;;  %v5865_v34 = vld [vmem:[#allocation5 + $0x308] ss:$24 sps:$4 sm:$0xff]   ;;  %v5870_v18 = vld [vmem:[#allocation5 + $0x3c] ss:$24 sps:$4 sm:$0xff]  }
 0x3e3   :  { %v6589_v31 = vadd.f32 %v2523_v22, %v6563_v59  ;;  %v2525_v32 = vpop.f32.mrb[5].mxu0  ;;  %v6591_v33 = vpop.f32.mrb[5].mxu1  ;;  %v5807_v59 = vld [vmem:[#allocation5 + $0x450] ss:$24 sps:$4 sm:$0xff]   ;;  %v5876_v22 = vld [vmem:[#allocation5 + $0x6c] ss:$24 sps:$4 sm:$0xff]  }
 0x3e4   :  { %v6594_v35 = vadd.f32 %v2525_v32, %v6565_v61  ;;  %v2527_v8 = vpop.f32.mrb[6].mxu0  ;;  %v2568_v37 = vpop.f32.mrb[6].mxu1  ;;  %4301 = vmatpush1.bf16.msra.mxu0 %v5795_v30  ;;  %v5818_v61 = vld [vmem:[#allocation5 + $0x784] ss:$24 sps:$4 sm:$0xff]   ;;  %v5874_v32 = vld [vmem:[#allocation5 + $0x68] ss:$24 sps:$4 sm:$0xff]  }
 0x3e5   :  { %4342 = vmatpush1.bf16.msra.mxu1 %v5798_v19  ;;  %v2528_v38 = vpop.f32.mrb[7].mxu0  ;;  %v2569_v40 = vpop.f32.mrb[7].mxu1  ;;  %4302 = vmatprep.subr.bf16.mxu0 %v5803_v21  ;;  %v5873_v30 = vld [vmem:[#allocation5 + $0x33c] ss:$24 sps:$4 sm:$0xff]   ;;  %v5868_v19 = vld [vmem:[#allocation5 + $0x38] ss:$24 sps:$4 sm:$0xff]  }
 0x3e6   :  { %4343 = vmatprep.subr.bf16.mxu1 %v5806_v26  ;;  %v5871_v21 = vld [vmem:[#allocation5 + $0x338] ss:$24 sps:$4 sm:$0xff]   ;;  %v5879_v26 = vld [vmem:[#allocation5 + $0x36c] ss:$24 sps:$4 sm:$0xff]   ;;  %v5877_v8 = vld [vmem:[#allocation5 + $0x368] ss:$24 sps:$4 sm:$0xff]  }
 0x3e7   :  { %v5882_v37 = vld [vmem:[#allocation5 + $0x9c] ss:$24 sps:$4 sm:$0xff]   ;;  %v5880_v38 = vld [vmem:[#allocation5 + $0x98] ss:$24 sps:$4 sm:$0xff]  }
 0x3e8   :  { %4303 = vmatpush1.bf16.msra.mxu0 %v5801_v24  ;;  %v5885_v24 = vld [vmem:[#allocation5 + $0x39c] ss:$24 sps:$4 sm:$0xff]   ;;  %v5883_v40 = vld [vmem:[#allocation5 + $0x398] ss:$24 sps:$4 sm:$0xff]  }
 0x3e9   :  { %4344 = vmatpush1.bf16.msra.mxu1 %v5804_v41  ;;  %4304 = vmatprep.subr.bf16.mxu0 %v5809_v7  ;;  %v5888_v41 = vld [vmem:[#allocation5 + $0xcc] ss:$24 sps:$4 sm:$0xff]  }
 0x3ea   :  { %4345 = vmatprep.subr.bf16.mxu1 %v5812_v15  ;;  %v5891_v7 = vld [vmem:[#allocation5 + $0x3cc] ss:$24 sps:$4 sm:$0xff]   ;;  %v5886_v15 = vld [vmem:[#allocation5 + $0xc8] ss:$24 sps:$4 sm:$0xff]  }
 0x3ec   :  { %4305 = vmatpush1.bf16.msra.mxu0 %v5807_v59  ;;  %v5889_v59 = vld [vmem:[#allocation5 + $0x3c8] ss:$24 sps:$4 sm:$0xff]  }
 0x3ed   :  { %4346 = vmatpush1.bf16.msra.mxu1 %v5810_v43  ;;  %4306 = vmatprep.subr.bf16.mxu0 %v5815_v28  ;;  %v5894_v43 = vld [vmem:[#allocation5 + $0xfc] ss:$24 sps:$4 sm:$0xff]  }
 0x3ee   :  { %4347 = vmatprep.subr.bf16.mxu1 %v5818_v61  ;;  %v5897_v28 = vld [vmem:[#allocation5 + $0x3fc] ss:$24 sps:$4 sm:$0xff]   ;;  %v5892_v61 = vld [vmem:[#allocation5 + $0xf8] ss:$24 sps:$4 sm:$0xff]  }
 0x3f0   :  { %4307 = vmatpush1.bf16.msra.mxu0 %v5813_v9  ;;  %v5895_v9 = vld [vmem:[#allocation5 + $0x3f8] ss:$24 sps:$4 sm:$0xff]  }
 0x3f1   :  { %4348 = vmatpush1.bf16.msra.mxu1 %v5816_v44  ;;  %4308 = vmatprep.subr.bf16.mxu0 %v5821_v29  ;;  %v5900_v44 = vld [vmem:[#allocation5 + $0x12c] ss:$24 sps:$4 sm:$0xff]  }
 0x3f2   :  { %4349 = vmatprep.subr.bf16.mxu1 %v5824_v45  ;;  %v5903_v45 = vld [vmem:[#allocation5 + $0x42c] ss:$24 sps:$4 sm:$0xff]  }
 0x3f4   :  { %4309 = vmatpush1.bf16.msra.mxu0 %v5819_v46 }
 0x3f5   :  { %4350 = vmatpush1.bf16.msra.mxu1 %v5822_v47  ;;  %4310 = vmatprep.subr.bf16.mxu0 %v5827_v10 }
 0x3f6   :  { %4351 = vmatprep.subr.bf16.mxu1 %v5830_v3 }
 0x3f8   :  { %4311 = vmatpush1.bf16.msra.mxu0 %v5825_v50 }
 0x3f9   :  { %4352 = vmatpush1.bf16.msra.mxu1 %v5828_v20  ;;  %4312 = vmatprep.subr.bf16.mxu0 %v5833_v4  ;;  %v5898_v4 = vld [vmem:[#allocation5 + $0x128] ss:$24 sps:$4 sm:$0xff]  }
 0x3fa   :  { %4353 = vmatprep.subr.bf16.mxu1 %v5836_v16 }
 0x3fc   :  { %4313 = vmatpush1.bf16.msra.mxu0 %v5831_v51 }
 0x3fd   :  { %4354 = vmatpush1.bf16.msra.mxu1 %v5834_v11  ;;  %4314 = vmatprep.subr.bf16.mxu0 %v5839_v52  ;;  %v5901_v52 = vld [vmem:[#allocation5 + $0x428] ss:$24 sps:$4 sm:$0xff]  }
 0x3fe   :  { %4355 = vmatprep.subr.bf16.mxu1 %v5842_v5  ;;  %v5906_v5 = vld [vmem:[#allocation5 + $0x15c] ss:$24 sps:$4 sm:$0xff]  }
 0x400   :  { %4315 = vmatpush1.bf16.msra.mxu0 %v5837_v55 }
 0x401   :  { %4356 = vmatpush1.bf16.msra.mxu1 %v5840_v56  ;;  %4316 = vmatprep.subr.bf16.mxu0 %v5845_v27  ;;  %v5904_v27 = vld [vmem:[#allocation5 + $0x158] ss:$24 sps:$4 sm:$0xff]  }
 0x402   :  { %4357 = vmatprep.subr.bf16.mxu1 %v5848_v57  ;;  %v5912_v57 = vld [vmem:[#allocation5 + $0x18c] ss:$24 sps:$4 sm:$0xff]  }
 0x404   :  { %4317 = vmatpush1.bf16.msra.mxu0 %v5843_v58  ;;  %v5915_v58 = vld [vmem:[#allocation5 + $0x48c] ss:$24 sps:$4 sm:$0xff]  }
 0x405   :  { %4358 = vmatpush1.bf16.msra.mxu1 %v5846_v62  ;;  %4318 = vmatprep.subr.bf16.mxu0 %v5851_v60  ;;  %v5910_v62 = vld [vmem:[#allocation5 + $0x188] ss:$24 sps:$4 sm:$0xff]  }
 0x406   :  { %4359 = vmatprep.subr.bf16.mxu1 %v5854_v25  ;;  %v5913_v60 = vld [vmem:[#allocation5 + $0x488] ss:$24 sps:$4 sm:$0xff]   ;;  %v5918_v25 = vld [vmem:[#allocation5 + $0x1bc] ss:$24 sps:$4 sm:$0xff]  }
 0x408   :  { %4319 = vmatpush1.bf16.msra.mxu0 %v5849_v48  ;;  %v5921_v48 = vld [vmem:[#allocation5 + $0x4bc] ss:$24 sps:$4 sm:$0xff]  }
 0x409   :  { %4360 = vmatpush1.bf16.msra.mxu1 %v5852_v63  ;;  %4320 = vmatprep.subr.bf16.mxu0 %v5857_v0  ;;  %v5916_v63 = vld [vmem:[#allocation5 + $0x1b8] ss:$24 sps:$4 sm:$0xff]  }
 0x40a   :  { %4361 = vmatprep.subr.bf16.mxu1 %v5860_v1  ;;  %v5919_v0 = vld [vmem:[#allocation5 + $0x4b8] ss:$24 sps:$4 sm:$0xff]   ;;  %v5924_v1 = vld [vmem:[#allocation5 + $0x1ec] ss:$24 sps:$4 sm:$0xff]  }
 0x40c   :  { %4321 = vmatpush1.bf16.msra.mxu0 %v5855_v49  ;;  %v5927_v49 = vld [vmem:[#allocation5 + $0x4ec] ss:$24 sps:$4 sm:$0xff]  }
 0x40d   :  { %4362 = vmatpush1.bf16.msra.mxu1 %v5858_v2  ;;  %4372 = vmatprep.subr.bf16.mxu0 %v5864_v6  ;;  %v5922_v2 = vld [vmem:[#allocation5 + $0x1e8] ss:$24 sps:$4 sm:$0xff]  }
 0x40e   :  { %4413 = vmatprep.subr.bf16.mxu1 %v5867_v13  ;;  %v5925_v6 = vld [vmem:[#allocation5 + $0x4e8] ss:$24 sps:$4 sm:$0xff]   ;;  %v5930_v13 = vld [vmem:[#allocation5 + $0x21c] ss:$24 sps:$4 sm:$0xff]  }
 0x40f   :  { %4323 = vmatmul.mubr.bf16.vlgmr.msra.gmra.mrb[20].mxu0 %v6570_v53 }
 0x410   :  { %4364 = vmatmul.mubr.bf16.vlgmr.msra.gmra.mrb[20].mxu1 %v6572_v54  ;;  %4373 = vmatpush1.bf16.msra.mxu0 %v5862_v14  ;;  %v5933_v14 = vld [vmem:[#allocation5 + $0x51c] ss:$24 sps:$4 sm:$0xff]  }
 0x411   :  { %4414 = vmatpush1.bf16.msra.mxu1 %v5865_v34  ;;  %4374 = vmatprep.subr.bf16.mxu0 %v5870_v18  ;;  %v5928_v34 = vld [vmem:[#allocation5 + $0x218] ss:$24 sps:$4 sm:$0xff]  }
 0x412   :  { %4415 = vmatprep.subr.bf16.mxu1 %v5873_v30  ;;  %4404 = vmatprep.mubr.bf16.mxu0 %v6558_v17  ;;  %v5931_v18 = vld [vmem:[#allocation5 + $0x518] ss:$24 sps:$4 sm:$0xff]   ;;  %v5936_v30 = vld [vmem:[#allocation5 + $0x24c] ss:$24 sps:$4 sm:$0xff]  }
 0x413   :  { %4445 = vmatprep.mubr.bf16.mxu1 %v6576_v12 }
 0x414   :  { %4375 = vmatpush1.bf16.msra.mxu0 %v5868_v19  ;;  %v5939_v19 = vld [vmem:[#allocation5 + $0x54c] ss:$24 sps:$4 sm:$0xff]  }
 0x415   :  { %4416 = vmatpush1.bf16.msra.mxu1 %v5871_v21  ;;  %4376 = vmatprep.subr.bf16.mxu0 %v5876_v22  ;;  %v5934_v21 = vld [vmem:[#allocation5 + $0x248] ss:$24 sps:$4 sm:$0xff]  }
 0x416   :  { %4417 = vmatprep.subr.bf16.mxu1 %v5879_v26  ;;  %v5937_v22 = vld [vmem:[#allocation5 + $0x548] ss:$24 sps:$4 sm:$0xff]   ;;  %v5942_v26 = vld [vmem:[#allocation5 + $0x27c] ss:$24 sps:$4 sm:$0xff]  }
 0x418   :  { %4377 = vmatpush1.bf16.msra.mxu0 %v5874_v32  ;;  %v5945_v32 = vld [vmem:[#allocation5 + $0x57c] ss:$24 sps:$4 sm:$0xff]  }
 0x419   :  { %4418 = vmatpush1.bf16.msra.mxu1 %v5877_v8  ;;  %4378 = vmatprep.subr.bf16.mxu0 %v5882_v37  ;;  %v5940_v8 = vld [vmem:[#allocation5 + $0x278] ss:$24 sps:$4 sm:$0xff]  }
 0x41a   :  { %4419 = vmatprep.subr.bf16.mxu1 %v5885_v24  ;;  %v5943_v37 = vld [vmem:[#allocation5 + $0x578] ss:$24 sps:$4 sm:$0xff]   ;;  %v5948_v24 = vld [vmem:[#allocation5 + $0x2ac] ss:$24 sps:$4 sm:$0xff]  }
 0x41c   :  { %4379 = vmatpush1.bf16.msra.mxu0 %v5880_v38  ;;  %v5951_v38 = vld [vmem:[#allocation5 + $0x5ac] ss:$24 sps:$4 sm:$0xff]  }
 0x41d   :  { %4420 = vmatpush1.bf16.msra.mxu1 %v5883_v40  ;;  %4380 = vmatprep.subr.bf16.mxu0 %v5888_v41  ;;  %v5946_v40 = vld [vmem:[#allocation5 + $0x2a8] ss:$24 sps:$4 sm:$0xff]  }
 0x41e   :  { %4421 = vmatprep.subr.bf16.mxu1 %v5891_v7  ;;  %v5949_v41 = vld [vmem:[#allocation5 + $0x5a8] ss:$24 sps:$4 sm:$0xff]   ;;  %v5954_v7 = vld [vmem:[#allocation5 + $0x2dc] ss:$24 sps:$4 sm:$0xff]  }
 0x420   :  { %4381 = vmatpush1.bf16.msra.mxu0 %v5886_v15  ;;  %v5957_v15 = vld [vmem:[#allocation5 + $0x5dc] ss:$24 sps:$4 sm:$0xff]  }
 0x421   :  { %4422 = vmatpush1.bf16.msra.mxu1 %v5889_v59  ;;  %4382 = vmatprep.subr.bf16.mxu0 %v5894_v43  ;;  %v5952_v59 = vld [vmem:[#allocation5 + $0x2d8] ss:$24 sps:$4 sm:$0xff]  }
 0x422   :  { %v2605_v29 = vpop.f32.mrb[8].mxu0  ;;  %4423 = vmatprep.subr.bf16.mxu1 %v5897_v28  ;;  %v5955_v43 = vld [vmem:[#allocation5 + $0x5d8] ss:$24 sps:$4 sm:$0xff]   ;;  %v5960_v28 = vld [vmem:[#allocation5 + $0x60c] ss:$24 sps:$4 sm:$0xff]  }
 0x423   :  { %v2606_v46 = vadd.f32 %v2605_v29, %v6586_v23  ;;  %v2646_v47 = vpop.f32.mrb[8].mxu1  ;;  %v2607_v10 = vpop.f32.mrb[9].mxu0  ;;  %v5909_v23 = vld [vmem:[#allocation5 + $0x45c] ss:$24 sps:$4 sm:$0xff]  }
 0x424   :  { %v2608_v3 = vadd.f32 %v2607_v10, %v6591_v33  ;;  %v2648_v50 = vpop.f32.mrb[9].mxu1  ;;  %v2609_v20 = vpop.f32.mrb[10].mxu0  ;;  %4383 = vmatpush1.bf16.msra.mxu0 %v5892_v61  ;;  %v5907_v33 = vld [vmem:[#allocation5 + $0x458] ss:$24 sps:$4 sm:$0xff]   ;;  %v5963_v61 = vld [vmem:[#allocation5 + $0x14] ss:$24 sps:$4 sm:$0xff]  }
 0x425   :  { %v6602_v16 = vadd.f32 %v2646_v47, %v2606_v46  ;;  %v2650_v51 = vpop.f32.mrb[10].mxu1  ;;  %4424 = vmatpush1.bf16.msra.mxu1 %v5895_v9  ;;  %v2610_v11 = vpop.f32.mrb[11].mxu0  ;;  %4384 = vmatprep.subr.bf16.mxu0 %v5900_v44  ;;  %v5958_v9 = vld [vmem:[#allocation5 + $0x608] ss:$24 sps:$4 sm:$0xff]   ;;  %v5966_v29 = vld [vmem:[#allocation5 + $0x63c] ss:$24 sps:$4 sm:$0xff]  }
 0x426   :  { %v6604_v55 = vadd.f32 %v2648_v50, %v2608_v3  ;;  %v2651_v56 = vpop.f32.mrb[11].mxu1  ;;  %4425 = vmatprep.subr.bf16.mxu1 %v5903_v45  ;;  %v5961_v44 = vld [vmem:[#allocation5 + $0x10] ss:$24 sps:$4 sm:$0xff]   ;;  %v5969_v45 = vld [vmem:[#allocation5 + $0x44] ss:$24 sps:$4 sm:$0xff]  }
 0x427   :  { %v5964_v46 = vld [vmem:[#allocation5 + $0x638] ss:$24 sps:$4 sm:$0xff]   ;;  %v5972_v10 = vld [vmem:[#allocation5 + $0x66c] ss:$24 sps:$4 sm:$0xff]   ;;  %v5970_v50 = vld [vmem:[#allocation5 + $0x668] ss:$24 sps:$4 sm:$0xff]  }
 0x428   :  { %4385 = vmatpush1.bf16.msra.mxu0 %v5898_v4  ;;  %v5967_v47 = vld [vmem:[#allocation5 + $0x40] ss:$24 sps:$4 sm:$0xff]   ;;  %v5975_v3 = vld [vmem:[#allocation5 + $0x74] ss:$24 sps:$4 sm:$0xff]   ;;  %v5973_v20 = vld [vmem:[#allocation5 + $0x70] ss:$24 sps:$4 sm:$0xff]  }
 0x429   :  { %4426 = vmatpush1.bf16.msra.mxu1 %v5901_v52  ;;  %4386 = vmatprep.subr.bf16.mxu0 %v5906_v5  ;;  %v5978_v4 = vld [vmem:[#allocation5 + $0x69c] ss:$24 sps:$4 sm:$0xff]   ;;  %v5976_v11 = vld [vmem:[#allocation5 + $0x698] ss:$24 sps:$4 sm:$0xff]   ;;  %v5984_v5 = vld [vmem:[#allocation5 + $0x6cc] ss:$24 sps:$4 sm:$0xff]  }
 0x42a   :  { %4427 = vmatprep.subr.bf16.mxu1 %v5909_v23  ;;  %v5981_v51 = vld [vmem:[#allocation5 + $0xa4] ss:$24 sps:$4 sm:$0xff]   ;;  %v5979_v52 = vld [vmem:[#allocation5 + $0xa0] ss:$24 sps:$4 sm:$0xff]   ;;  %v5987_v56 = vld [vmem:[#allocation5 + $0xd4] ss:$24 sps:$4 sm:$0xff]  }
 0x42b   :  { %v5982_v23 = vld [vmem:[#allocation5 + $0x6c8] ss:$24 sps:$4 sm:$0xff]  }
 0x42c   :  { %4387 = vmatpush1.bf16.msra.mxu0 %v5904_v27  ;;  %v5990_v27 = vld [vmem:[#allocation5 + $0x6fc] ss:$24 sps:$4 sm:$0xff]  }
 0x42d   :  { %4428 = vmatpush1.bf16.msra.mxu1 %v5907_v33  ;;  %4388 = vmatprep.subr.bf16.mxu0 %v5912_v57  ;;  %v5993_v33 = vld [vmem:[#allocation5 + $0x104] ss:$24 sps:$4 sm:$0xff]   ;;  %v5988_v57 = vld [vmem:[#allocation5 + $0x6f8] ss:$24 sps:$4 sm:$0xff]  }
 0x42e   :  { %4429 = vmatprep.subr.bf16.mxu1 %v5915_v58  ;;  %v5991_v58 = vld [vmem:[#allocation5 + $0x100] ss:$24 sps:$4 sm:$0xff]  }
 0x430   :  { %4389 = vmatpush1.bf16.msra.mxu0 %v5910_v62  ;;  %v5996_v62 = vld [vmem:[#allocation5 + $0x72c] ss:$24 sps:$4 sm:$0xff]  }
 0x431   :  { %4430 = vmatpush1.bf16.msra.mxu1 %v5913_v60  ;;  %4390 = vmatprep.subr.bf16.mxu0 %v5918_v25  ;;  %v5999_v25 = vld [vmem:[#allocation5 + $0x134] ss:$24 sps:$4 sm:$0xff]  }
 0x432   :  { %4431 = vmatprep.subr.bf16.mxu1 %v5921_v48 }
 0x434   :  { %4391 = vmatpush1.bf16.msra.mxu0 %v5916_v63 }
 0x435   :  { %4432 = vmatpush1.bf16.msra.mxu1 %v5919_v0  ;;  %4392 = vmatprep.subr.bf16.mxu0 %v5924_v1 }
 0x436   :  { %4433 = vmatprep.subr.bf16.mxu1 %v5927_v49 }
 0x438   :  { %4393 = vmatpush1.bf16.msra.mxu0 %v5922_v2  ;;  %v5994_v2 = vld [vmem:[#allocation5 + $0x728] ss:$24 sps:$4 sm:$0xff]  }
 0x439   :  { %4434 = vmatpush1.bf16.msra.mxu1 %v5925_v6  ;;  %4394 = vmatprep.subr.bf16.mxu0 %v5930_v13 }
 0x43a   :  { %4435 = vmatprep.subr.bf16.mxu1 %v5933_v14 }
 0x43c   :  { %4395 = vmatpush1.bf16.msra.mxu0 %v5928_v34  ;;  %v5997_v34 = vld [vmem:[#allocation5 + $0x130] ss:$24 sps:$4 sm:$0xff]  }
 0x43d   :  { %4436 = vmatpush1.bf16.msra.mxu1 %v5931_v18  ;;  %4396 = vmatprep.subr.bf16.mxu0 %v5936_v30  ;;  %v6002_v18 = vld [vmem:[#allocation5 + $0x75c] ss:$24 sps:$4 sm:$0xff]  }
 0x43e   :  { %4437 = vmatprep.subr.bf16.mxu1 %v5939_v19  ;;  %v6005_v19 = vld [vmem:[#allocation5 + $0x164] ss:$24 sps:$4 sm:$0xff]  }
 0x440   :  { %4397 = vmatpush1.bf16.msra.mxu0 %v5934_v21  ;;  %v6000_v21 = vld [vmem:[#allocation5 + $0x758] ss:$24 sps:$4 sm:$0xff]  }
 0x441   :  { %4438 = vmatpush1.bf16.msra.mxu1 %v5937_v22  ;;  %4398 = vmatprep.subr.bf16.mxu0 %v5942_v26  ;;  %v6003_v22 = vld [vmem:[#allocation5 + $0x160] ss:$24 sps:$4 sm:$0xff]   ;;  %v6008_v26 = vld [vmem:[#allocation5 + $0x78c] ss:$24 sps:$4 sm:$0xff]  }
 0x442   :  { %4439 = vmatprep.subr.bf16.mxu1 %v5945_v32  ;;  %v6011_v32 = vld [vmem:[#allocation5 + $0x194] ss:$24 sps:$4 sm:$0xff]  }
 0x444   :  { %4399 = vmatpush1.bf16.msra.mxu0 %v5940_v8  ;;  %v6006_v8 = vld [vmem:[#allocation5 + $0x788] ss:$24 sps:$4 sm:$0xff]  }
 0x445   :  { %4440 = vmatpush1.bf16.msra.mxu1 %v5943_v37  ;;  %4400 = vmatprep.subr.bf16.mxu0 %v5948_v24  ;;  %v6009_v37 = vld [vmem:[#allocation5 + $0x190] ss:$24 sps:$4 sm:$0xff]   ;;  %v6014_v24 = vld [vmem:[#allocation5 + $0x7bc] ss:$24 sps:$4 sm:$0xff]  }
 0x446   :  { %4441 = vmatprep.subr.bf16.mxu1 %v5951_v38  ;;  %v6017_v38 = vld [vmem:[#allocation5 + $0x1c4] ss:$24 sps:$4 sm:$0xff]  }
 0x448   :  { %4401 = vmatpush1.bf16.msra.mxu0 %v5946_v40  ;;  %v6012_v40 = vld [vmem:[#allocation5 + $0x7b8] ss:$24 sps:$4 sm:$0xff]  }
 0x449   :  { %4442 = vmatpush1.bf16.msra.mxu1 %v5949_v41  ;;  %4402 = vmatprep.subr.bf16.mxu0 %v5954_v7  ;;  %v6015_v41 = vld [vmem:[#allocation5 + $0x1c0] ss:$24 sps:$4 sm:$0xff]   ;;  %v6020_v7 = vld [vmem:[#allocation5 + $0x7ec] ss:$24 sps:$4 sm:$0xff]  }
 0x44a   :  { %4443 = vmatprep.subr.bf16.mxu1 %v5957_v15  ;;  %v6023_v15 = vld [vmem:[#allocation5 + $0x1f4] ss:$24 sps:$4 sm:$0xff]  }
 0x44c   :  { %4403 = vmatpush1.bf16.msra.mxu0 %v5952_v59  ;;  %v6018_v59 = vld [vmem:[#allocation5 + $0x7e8] ss:$24 sps:$4 sm:$0xff]  }
 0x44d   :  { %4444 = vmatpush1.bf16.msra.mxu1 %v5955_v43  ;;  %4454 = vmatprep.subr.bf16.mxu0 %v5960_v28  ;;  %v6021_v43 = vld [vmem:[#allocation5 + $0x1f0] ss:$24 sps:$4 sm:$0xff]   ;;  %v6026_v28 = vld [vmem:[#allocation5 + $0x81c] ss:$24 sps:$4 sm:$0xff]  }
 0x44e   :  { %4495 = vmatprep.subr.bf16.mxu1 %v5963_v61  ;;  %v6029_v61 = vld [vmem:[#allocation5 + $0x224] ss:$24 sps:$4 sm:$0xff]  }
 0x44f   :  { %4405 = vmatmul.mubr.bf16.vlgmr.msra.gmra.mrb[24].mxu0 %v6553_v42 }
 0x450   :  { %4446 = vmatmul.mubr.bf16.vlgmr.msra.gmra.mrb[24].mxu1 %v6570_v53  ;;  %4455 = vmatpush1.bf16.msra.mxu0 %v5958_v9  ;;  %v6024_v9 = vld [vmem:[#allocation5 + $0x818] ss:$24 sps:$4 sm:$0xff]  }
 0x451   :  { %4496 = vmatpush1.bf16.msra.mxu1 %v5961_v44  ;;  %4456 = vmatprep.subr.bf16.mxu0 %v5966_v29  ;;  %v6027_v44 = vld [vmem:[#allocation5 + $0x220] ss:$24 sps:$4 sm:$0xff]   ;;  %v6032_v29 = vld [vmem:[#allocation5 + $0x84c] ss:$24 sps:$4 sm:$0xff]  }
 0x452   :  { %4497 = vmatprep.subr.bf16.mxu1 %v5969_v45  ;;  %4486 = vmatprep.mubr.bf16.mxu0 %v6581_v39  ;;  %v6035_v45 = vld [vmem:[#allocation5 + $0x254] ss:$24 sps:$4 sm:$0xff]  }
 0x453   :  { %4527 = vmatprep.mubr.bf16.mxu1 %v6558_v17  ;;  %v5985_v17 = vld [vmem:[#allocation5 + $0xd0] ss:$24 sps:$4 sm:$0xff]  }
 0x454   :  { %4457 = vmatpush1.bf16.msra.mxu0 %v5964_v46  ;;  %v6030_v46 = vld [vmem:[#allocation5 + $0x848] ss:$24 sps:$4 sm:$0xff]  }
 0x455   :  { %4498 = vmatpush1.bf16.msra.mxu1 %v5967_v47  ;;  %4458 = vmatprep.subr.bf16.mxu0 %v5972_v10  ;;  %v6033_v47 = vld [vmem:[#allocation5 + $0x250] ss:$24 sps:$4 sm:$0xff]   ;;  %v6038_v10 = vld [vmem:[#allocation5 + $0x87c] ss:$24 sps:$4 sm:$0xff]  }
 0x456   :  { %4499 = vmatprep.subr.bf16.mxu1 %v5975_v3  ;;  %v6041_v3 = vld [vmem:[#allocation5 + $0x284] ss:$24 sps:$4 sm:$0xff]  }
 0x458   :  { %4459 = vmatpush1.bf16.msra.mxu0 %v5970_v50  ;;  %v6036_v50 = vld [vmem:[#allocation5 + $0x878] ss:$24 sps:$4 sm:$0xff]  }
 0x459   :  { %4500 = vmatpush1.bf16.msra.mxu1 %v5973_v20  ;;  %4460 = vmatprep.subr.bf16.mxu0 %v5978_v4  ;;  %v6039_v20 = vld [vmem:[#allocation5 + $0x280] ss:$24 sps:$4 sm:$0xff]   ;;  %v6044_v4 = vld [vmem:[#allocation5 + $0x8ac] ss:$24 sps:$4 sm:$0xff]  }
 0x45a   :  { %4501 = vmatprep.subr.bf16.mxu1 %v5981_v51  ;;  %v6047_v51 = vld [vmem:[#allocation5 + $0x2b4] ss:$24 sps:$4 sm:$0xff]  }
 0x45c   :  { %4461 = vmatpush1.bf16.msra.mxu0 %v5976_v11  ;;  %v6042_v11 = vld [vmem:[#allocation5 + $0x8a8] ss:$24 sps:$4 sm:$0xff]  }
 0x45d   :  { %4502 = vmatpush1.bf16.msra.mxu1 %v5979_v52  ;;  %4462 = vmatprep.subr.bf16.mxu0 %v5984_v5  ;;  %v6045_v52 = vld [vmem:[#allocation5 + $0x2b0] ss:$24 sps:$4 sm:$0xff]   ;;  %v6050_v5 = vld [vmem:[#allocation5 + $0x8dc] ss:$24 sps:$4 sm:$0xff]  }
 0x45e   :  { %4503 = vmatprep.subr.bf16.mxu1 %v5987_v56  ;;  %v6053_v56 = vld [vmem:[#allocation5 + $0x2e4] ss:$24 sps:$4 sm:$0xff]  }
 0x460   :  { %4463 = vmatpush1.bf16.msra.mxu0 %v5982_v23  ;;  %v6048_v23 = vld [vmem:[#allocation5 + $0x8d8] ss:$24 sps:$4 sm:$0xff]  }
 0x461   :  { %4504 = vmatpush1.bf16.msra.mxu1 %v5985_v17  ;;  %4464 = vmatprep.subr.bf16.mxu0 %v5990_v27  ;;  %v6051_v17 = vld [vmem:[#allocation5 + $0x2e0] ss:$24 sps:$4 sm:$0xff]   ;;  %v6056_v27 = vld [vmem:[#allocation5 + $0x314] ss:$24 sps:$4 sm:$0xff]  }
 0x462   :  { %v2687_v60 = vpop.f32.mrb[12].mxu0  ;;  %4505 = vmatprep.subr.bf16.mxu1 %v5993_v33  ;;  %v6059_v33 = vld [vmem:[#allocation5 + $0x614] ss:$24 sps:$4 sm:$0xff]  }
 0x463   :  { %v2728_v48 = vpop.f32.mrb[12].mxu1  ;;  %v2689_v63 = vpop.f32.mrb[13].mxu0 }
 0x464   :  { %v6610_v0 = vadd.f32 %v2728_v48, %v2687_v60  ;;  %v2730_v1 = vpop.f32.mrb[13].mxu1  ;;  %v2691_v49 = vpop.f32.mrb[14].mxu0  ;;  %4465 = vmatpush1.bf16.msra.mxu0 %v5988_v57  ;;  %v6054_v57 = vld [vmem:[#allocation5 + $0x310] ss:$24 sps:$4 sm:$0xff]   ;;  %v6065_v60 = vld [vmem:[#allocation5 + $0x644] ss:$24 sps:$4 sm:$0xff]  }
 0x465   :  { %v6612_v6 = vadd.f32 %v2730_v1, %v2689_v63  ;;  %v2732_v13 = vpop.f32.mrb[14].mxu1  ;;  %4506 = vmatpush1.bf16.msra.mxu1 %v5991_v58  ;;  %v2692_v14 = vpop.f32.mrb[15].mxu0  ;;  %4466 = vmatprep.subr.bf16.mxu0 %v5996_v62  ;;  %v6057_v58 = vld [vmem:[#allocation5 + $0x610] ss:$24 sps:$4 sm:$0xff]   ;;  %v6062_v62 = vld [vmem:[#allocation5 + $0x344] ss:$24 sps:$4 sm:$0xff]  }
 0x466   :  { %v2733_v30 = vpop.f32.mrb[15].mxu1  ;;  %4507 = vmatprep.subr.bf16.mxu1 %v5999_v25  ;;  %v6060_v25 = vld [vmem:[#allocation5 + $0x340] ss:$24 sps:$4 sm:$0xff]   ;;  %v6068_v63 = vld [vmem:[#allocation5 + $0x374] ss:$24 sps:$4 sm:$0xff]  }
 0x467   :  { %v6063_v48 = vld [vmem:[#allocation5 + $0x640] ss:$24 sps:$4 sm:$0xff]   ;;  %v6071_v1 = vld [vmem:[#allocation5 + $0x674] ss:$24 sps:$4 sm:$0xff]   ;;  %v6066_v49 = vld [vmem:[#allocation5 + $0x370] ss:$24 sps:$4 sm:$0xff]  }
 0x468   :  { %4467 = vmatpush1.bf16.msra.mxu0 %v5994_v2  ;;  %v6069_v2 = vld [vmem:[#allocation5 + $0x670] ss:$24 sps:$4 sm:$0xff]   ;;  %v6074_v13 = vld [vmem:[#allocation5 + $0x3a4] ss:$24 sps:$4 sm:$0xff]   ;;  %v6072_v14 = vld [vmem:[#allocation5 + $0x3a0] ss:$24 sps:$4 sm:$0xff]  }
 0x469   :  { %4508 = vmatpush1.bf16.msra.mxu1 %v5997_v34  ;;  %4468 = vmatprep.subr.bf16.mxu0 %v6002_v18  ;;  %v6075_v34 = vld [vmem:[#allocation5 + $0x6a0] ss:$24 sps:$4 sm:$0xff]   ;;  %v6080_v18 = vld [vmem:[#allocation5 + $0x3d4] ss:$24 sps:$4 sm:$0xff]  }
 0x46a   :  { %4509 = vmatprep.subr.bf16.mxu1 %v6005_v19  ;;  %v6083_v30 = vld [vmem:[#allocation5 + $0x6d4] ss:$24 sps:$4 sm:$0xff]   ;;  %v6086_v19 = vld [vmem:[#allocation5 + $0x404] ss:$24 sps:$4 sm:$0xff]  }
 0x46c   :  { %4469 = vmatpush1.bf16.msra.mxu0 %v6000_v21  ;;  %v6089_v21 = vld [vmem:[#allocation5 + $0x704] ss:$24 sps:$4 sm:$0xff]  }
 0x46d   :  { %4510 = vmatpush1.bf16.msra.mxu1 %v6003_v22  ;;  %4470 = vmatprep.subr.bf16.mxu0 %v6008_v26  ;;  %v6084_v22 = vld [vmem:[#allocation5 + $0x400] ss:$24 sps:$4 sm:$0xff]  }
 0x46e   :  { %4511 = vmatprep.subr.bf16.mxu1 %v6011_v32  ;;  %v6087_v26 = vld [vmem:[#allocation5 + $0x700] ss:$24 sps:$4 sm:$0xff]   ;;  %v6092_v32 = vld [vmem:[#allocation5 + $0x434] ss:$24 sps:$4 sm:$0xff]  }
 0x470   :  { %4471 = vmatpush1.bf16.msra.mxu0 %v6006_v8 }
 0x471   :  { %4512 = vmatpush1.bf16.msra.mxu1 %v6009_v37  ;;  %4472 = vmatprep.subr.bf16.mxu0 %v6014_v24  ;;  %v6095_v37 = vld [vmem:[#allocation5 + $0x734] ss:$24 sps:$4 sm:$0xff]  }
 0x472   :  { %4513 = vmatprep.subr.bf16.mxu1 %v6017_v38 }
 0x474   :  { %4473 = vmatpush1.bf16.msra.mxu0 %v6012_v40 }
 0x475   :  { %4514 = vmatpush1.bf16.msra.mxu1 %v6015_v41  ;;  %4474 = vmatprep.subr.bf16.mxu0 %v6020_v7 }
 0x476   :  { %4515 = vmatprep.subr.bf16.mxu1 %v6023_v15 }
 0x478   :  { %4475 = vmatpush1.bf16.msra.mxu0 %v6018_v59 }
 0x479   :  { %4516 = vmatpush1.bf16.msra.mxu1 %v6021_v43  ;;  %4476 = vmatprep.subr.bf16.mxu0 %v6026_v28  ;;  %v6090_v43 = vld [vmem:[#allocation5 + $0x430] ss:$24 sps:$4 sm:$0xff]  }
 0x47a   :  { %4517 = vmatprep.subr.bf16.mxu1 %v6029_v61 }
 0x47c   :  { %4477 = vmatpush1.bf16.msra.mxu0 %v6024_v9 }
 0x47d   :  { %4518 = vmatpush1.bf16.msra.mxu1 %v6027_v44  ;;  %4478 = vmatprep.subr.bf16.mxu0 %v6032_v29  ;;  %v6098_v44 = vld [vmem:[#allocation5 + $0x464] ss:$24 sps:$4 sm:$0xff]  }
 0x47e   :  { %4519 = vmatprep.subr.bf16.mxu1 %v6035_v45  ;;  %v6096_v45 = vld [vmem:[#allocation5 + $0x460] ss:$24 sps:$4 sm:$0xff]  }
 0x480   :  { %4479 = vmatpush1.bf16.msra.mxu0 %v6030_v46  ;;  %v6104_v46 = vld [vmem:[#allocation5 + $0x494] ss:$24 sps:$4 sm:$0xff]  }
 0x481   :  { %4520 = vmatpush1.bf16.msra.mxu1 %v6033_v47  ;;  %4480 = vmatprep.subr.bf16.mxu0 %v6038_v10  ;;  %v6107_v47 = vld [vmem:[#allocation5 + $0x794] ss:$24 sps:$4 sm:$0xff]   ;;  %v6105_v10 = vld [vmem:[#allocation5 + $0x790] ss:$24 sps:$4 sm:$0xff]  }
 0x482   :  { %4521 = vmatprep.subr.bf16.mxu1 %v6041_v3  ;;  %v6110_v3 = vld [vmem:[#allocation5 + $0x4c4] ss:$24 sps:$4 sm:$0xff]  }
 0x484   :  { %4481 = vmatpush1.bf16.msra.mxu0 %v6036_v50  ;;  %v6113_v50 = vld [vmem:[#allocation5 + $0x7c4] ss:$24 sps:$4 sm:$0xff]  }
 0x485   :  { %4522 = vmatpush1.bf16.msra.mxu1 %v6039_v20  ;;  %4482 = vmatprep.subr.bf16.mxu0 %v6044_v4  ;;  %v6108_v20 = vld [vmem:[#allocation5 + $0x4c0] ss:$24 sps:$4 sm:$0xff]  }
 0x486   :  { %4523 = vmatprep.subr.bf16.mxu1 %v6047_v51  ;;  %v6111_v4 = vld [vmem:[#allocation5 + $0x7c0] ss:$24 sps:$4 sm:$0xff]   ;;  %v6116_v51 = vld [vmem:[#allocation5 + $0x4f4] ss:$24 sps:$4 sm:$0xff]  }
 0x488   :  { %4483 = vmatpush1.bf16.msra.mxu0 %v6042_v11  ;;  %v6119_v11 = vld [vmem:[#allocation5 + $0x7f4] ss:$24 sps:$4 sm:$0xff]  }
 0x489   :  { %4524 = vmatpush1.bf16.msra.mxu1 %v6045_v52  ;;  %4484 = vmatprep.subr.bf16.mxu0 %v6050_v5  ;;  %v6114_v52 = vld [vmem:[#allocation5 + $0x4f0] ss:$24 sps:$4 sm:$0xff]  }
 0x48a   :  { %4525 = vmatprep.subr.bf16.mxu1 %v6053_v56  ;;  %v6117_v5 = vld [vmem:[#allocation5 + $0x7f0] ss:$24 sps:$4 sm:$0xff]   ;;  %v6122_v56 = vld [vmem:[#allocation5 + $0x524] ss:$24 sps:$4 sm:$0xff]  }
 0x48c   :  { %4485 = vmatpush1.bf16.msra.mxu0 %v6048_v23  ;;  %v6125_v23 = vld [vmem:[#allocation5 + $0x824] ss:$24 sps:$4 sm:$0xff]  }
 0x48d   :  { %4526 = vmatpush1.bf16.msra.mxu1 %v6051_v17  ;;  %4536 = vmatprep.subr.bf16.mxu0 %v6056_v27  ;;  %v6120_v17 = vld [vmem:[#allocation5 + $0x520] ss:$24 sps:$4 sm:$0xff]  }
 0x48e   :  { %4577 = vmatprep.subr.bf16.mxu1 %v6059_v33  ;;  %v6123_v27 = vld [vmem:[#allocation5 + $0x820] ss:$24 sps:$4 sm:$0xff]   ;;  %v6128_v33 = vld [vmem:[#allocation5 + $0x554] ss:$24 sps:$4 sm:$0xff]  }
 0x48f   :  { %4487 = vmatmul.mubr.bf16.vlgmr.msra.gmra.mrb[28].mxu0 %v6572_v54 }
 0x490   :  { %4528 = vmatmul.mubr.bf16.vlgmr.msra.gmra.mrb[28].mxu1 %v6553_v42  ;;  %4537 = vmatpush1.bf16.msra.mxu0 %v6054_v57  ;;  %v6077_v42 = vld [vmem:[#allocation5 + $0x6a4] ss:$24 sps:$4 sm:$0xff]   ;;  %v6131_v57 = vld [vmem:[#allocation5 + $0x854] ss:$24 sps:$4 sm:$0xff]  }
 0x491   :  { %4578 = vmatpush1.bf16.msra.mxu1 %v6057_v58  ;;  %4538 = vmatprep.subr.bf16.mxu0 %v6062_v62  ;;  %v6126_v58 = vld [vmem:[#allocation5 + $0x550] ss:$24 sps:$4 sm:$0xff]  }
 0x492   :  { %4579 = vmatprep.subr.bf16.mxu1 %v6065_v60  ;;  %4568 = vmatprep.mubr.bf16.mxu0 %v6576_v12  ;;  %v6078_v12 = vld [vmem:[#allocation5 + $0x3d0] ss:$24 sps:$4 sm:$0xff]   ;;  %v6134_v60 = vld [vmem:[#allocation5 + $0x584] ss:$24 sps:$4 sm:$0xff]  }
 0x493   :  { %4609 = vmatprep.mubr.bf16.mxu1 %v6581_v39  ;;  %v6081_v39 = vld [vmem:[#allocation5 + $0x6d0] ss:$24 sps:$4 sm:$0xff]  }
 0x494   :  { %4539 = vmatpush1.bf16.msra.mxu0 %v6060_v25  ;;  %v6129_v62 = vld [vmem:[#allocation5 + $0x850] ss:$24 sps:$4 sm:$0xff]   ;;  %v6137_v25 = vld [vmem:[#allocation5 + $0x884] ss:$24 sps:$4 sm:$0xff]  }
 0x495   :  { %4580 = vmatpush1.bf16.msra.mxu1 %v6063_v48  ;;  %4540 = vmatprep.subr.bf16.mxu0 %v6068_v63  ;;  %v6132_v48 = vld [vmem:[#allocation5 + $0x580] ss:$24 sps:$4 sm:$0xff]  }
 0x496   :  { %4581 = vmatprep.subr.bf16.mxu1 %v6071_v1  ;;  %v6135_v63 = vld [vmem:[#allocation5 + $0x880] ss:$24 sps:$4 sm:$0xff]   ;;  %v6140_v1 = vld [vmem:[#allocation5 + $0x5b4] ss:$24 sps:$4 sm:$0xff]  }
 0x498   :  { %4541 = vmatpush1.bf16.msra.mxu0 %v6066_v49  ;;  %v6143_v49 = vld [vmem:[#allocation5 + $0x8b4] ss:$24 sps:$4 sm:$0xff]  }
 0x499   :  { %4582 = vmatpush1.bf16.msra.mxu1 %v6069_v2  ;;  %4542 = vmatprep.subr.bf16.mxu0 %v6074_v13  ;;  %v6138_v2 = vld [vmem:[#allocation5 + $0x5b0] ss:$24 sps:$4 sm:$0xff]  }
 0x49a   :  { %4583 = vmatprep.subr.bf16.mxu1 %v6077_v42  ;;  %v6141_v13 = vld [vmem:[#allocation5 + $0x8b0] ss:$24 sps:$4 sm:$0xff]   ;;  %v6146_v42 = vld [vmem:[#allocation5 + $0x5e4] ss:$24 sps:$4 sm:$0xff]  }
 0x49c   :  { %4543 = vmatpush1.bf16.msra.mxu0 %v6072_v14  ;;  %v6149_v14 = vld [vmem:[#allocation5 + $0x8e4] ss:$24 sps:$4 sm:$0xff]  }
 0x49d   :  { %4584 = vmatpush1.bf16.msra.mxu1 %v6075_v34  ;;  %4544 = vmatprep.subr.bf16.mxu0 %v6080_v18  ;;  %v6144_v34 = vld [vmem:[#allocation5 + $0x5e0] ss:$24 sps:$4 sm:$0xff]  }
 0x49e   :  { %4585 = vmatprep.subr.bf16.mxu1 %v6083_v30  ;;  %v6147_v18 = vld [vmem:[#allocation5 + $0x8e0] ss:$24 sps:$4 sm:$0xff]   ;;  %v4622_v30 = vsub.s32 0, %v6544_v36 }
 0x4a0   :  { %4545 = vmatpush1.bf16.msra.mxu0 %v6078_v12  ;;  %v4618_v12 = vld [vmem:[#allocation8] sm:$0x3f] }
 0x4a1   :  { %4586 = vmatpush1.bf16.msra.mxu1 %v6081_v39  ;;  %4546 = vmatprep.subr.bf16.mxu0 %v6086_v19  ;;  %v4626_v39 = vsub.s32 1, %v6544_v36 }
 0x4a2   :  { %v2769_v8 = vpop.f32.mrb[16].mxu0  ;;  %4587 = vmatprep.subr.bf16.mxu1 %v6089_v21 }
 0x4a3   :  { %v6619_v24 = vadd.f32 %v2769_v8, %v6610_v0  ;;  %v4283_v38 = vpop.f32.mrb[16].mxu1  ;;  %v2771_v40 = vpop.f32.mrb[17].mxu0  ;;  %v6093_v0 = vld [vmem:[#allocation5 + $0x730] ss:$24 sps:$4 sm:$0xff]  }
 0x4a4   :  { %v6622_v41 = vadd.f32 %v4283_v38, %v6589_v31  ;;  %v6625_v7 = vadd.f32 %v2771_v40, %v6612_v6  ;;  %v4285_v15 = vpop.f32.mrb[17].mxu1  ;;  %v2773_v59 = vpop.f32.mrb[18].mxu0  ;;  %4547 = vmatpush1.bf16.msra.mxu0 %v6084_v22  ;;  %v6101_v31 = vld [vmem:[#allocation5 + $0x764] ss:$24 sps:$4 sm:$0xff]   ;;  %v6099_v6 = vld [vmem:[#allocation5 + $0x760] ss:$24 sps:$4 sm:$0xff]   ;;  %v4627_v38 = vrot.slane %v4618_v12, %v4626_v39 }
 0x4a5   :  { %v6628_v28 = vadd.f32 %v4285_v15, %v6594_v35  ;;  %v4287_v61 = vpop.f32.mrb[18].mxu1  ;;  %4588 = vmatpush1.bf16.msra.mxu1 %v6087_v26  ;;  %v2774_v9 = vpop.f32.mrb[19].mxu0  ;;  %4548 = vmatprep.subr.bf16.mxu0 %v6092_v32  ;;  %v6102_v35 = vld [vmem:[#allocation5 + $0x490] ss:$24 sps:$4 sm:$0xff]   ;;  %v4623_v26 = vrot.slane %v4618_v12, %v4622_v30 }
 0x4a6   :  { %v4288_v29 = vpop.f32.mrb[19].mxu1  ;;  %4589 = vmatprep.subr.bf16.mxu1 %v6095_v37 }
 0x4a8   :  { %4549 = vmatpush1.bf16.msra.mxu0 %v6090_v43 }
 0x4a9   :  { %4590 = vmatpush1.bf16.msra.mxu1 %v6093_v0  ;;  %4550 = vmatprep.subr.bf16.mxu0 %v6098_v44 }
 0x4aa   :  { %4591 = vmatprep.subr.bf16.mxu1 %v6101_v31 }
 0x4ac   :  { %4551 = vmatpush1.bf16.msra.mxu0 %v6096_v45 }
 0x4ad   :  { %4592 = vmatpush1.bf16.msra.mxu1 %v6099_v6  ;;  %4552 = vmatprep.subr.bf16.mxu0 %v6104_v46 }
 0x4ae   :  { %4593 = vmatprep.subr.bf16.mxu1 %v6107_v47 }
 0x4b0   :  { %4553 = vmatpush1.bf16.msra.mxu0 %v6102_v35 }
 0x4b1   :  { %4594 = vmatpush1.bf16.msra.mxu1 %v6105_v10  ;;  %4554 = vmatprep.subr.bf16.mxu0 %v6110_v3 }
 0x4b2   :  { %4595 = vmatprep.subr.bf16.mxu1 %v6113_v50  ;;  %v4630_v50 = vsub.s32 2, %v6544_v36 }
 0x4b4   :  { %4555 = vmatpush1.bf16.msra.mxu0 %v6108_v20  ;;  %v4634_v20 = vsub.s32 3, %v6544_v36 }
 0x4b5   :  { %4596 = vmatpush1.bf16.msra.mxu1 %v6111_v4  ;;  %4556 = vmatprep.subr.bf16.mxu0 %v6116_v51  ;;  %v4631_v4 = vrot.slane %v4618_v12, %v4630_v50 }
 0x4b6   :  { %4597 = vmatprep.subr.bf16.mxu1 %v6119_v11  ;;  %v4635_v11 = vrot.slane %v4618_v12, %v4634_v20 }
 0x4b8   :  { %4557 = vmatpush1.bf16.msra.mxu0 %v6114_v52 }
 0x4b9   :  { %4598 = vmatpush1.bf16.msra.mxu1 %v6117_v5  ;;  %4558 = vmatprep.subr.bf16.mxu0 %v6122_v56 }
 0x4ba   :  { %4599 = vmatprep.subr.bf16.mxu1 %v6125_v23 }
 0x4bc   :  { %4559 = vmatpush1.bf16.msra.mxu0 %v6120_v17 }
 0x4bd   :  { %4600 = vmatpush1.bf16.msra.mxu1 %v6123_v27  ;;  %4560 = vmatprep.subr.bf16.mxu0 %v6128_v33 }
 0x4be   :  { %4601 = vmatprep.subr.bf16.mxu1 %v6131_v57 }
 0x4c0   :  { %4561 = vmatpush1.bf16.msra.mxu0 %v6126_v58 }
 0x4c1   :  { %4602 = vmatpush1.bf16.msra.mxu1 %v6129_v62  ;;  %4562 = vmatprep.subr.bf16.mxu0 %v6134_v60 }
 0x4c2   :  { %4603 = vmatprep.subr.bf16.mxu1 %v6137_v25 }
 0x4c4   :  { %4563 = vmatpush1.bf16.msra.mxu0 %v6132_v48  ;;  %v4638_v48 = vsub.s32 4, %v6544_v36 }
 0x4c5   :  { %4604 = vmatpush1.bf16.msra.mxu1 %v6135_v63  ;;  %4564 = vmatprep.subr.bf16.mxu0 %v6140_v1  ;;  %v4642_v63 = vsub.s32 5, %v6544_v36 }
 0x4c6   :  { %4605 = vmatprep.subr.bf16.mxu1 %v6143_v49 }
 0x4c8   :  { %4565 = vmatpush1.bf16.msra.mxu0 %v6138_v2 }
 0x4c9   :  { %4606 = vmatpush1.bf16.msra.mxu1 %v6141_v13  ;;  %4566 = vmatprep.subr.bf16.mxu0 %v6146_v42 }
 0x4ca   :  { %4607 = vmatprep.subr.bf16.mxu1 %v6149_v14 }
 0x4cc   :  { %4567 = vmatpush1.bf16.msra.mxu0 %v6144_v34  ;;  %v4643_v34 = vrot.slane %v4618_v12, %v4642_v63 }
 0x4cd   :  { %4608 = vmatpush1.bf16.msra.mxu1 %v6147_v18 }
 0x4cf   :  { %4569 = vmatmul.mubr.bf16.vlgmr.msra.gmra.mrb[32].mxu0 %v6570_v53 }
 0x4d0   :  { %4610 = vmatmul.mubr.bf16.vlgmr.msra.gmra.mrb[32].mxu1 %v6572_v54 }
 0x4e2   :  { %v4324_v19 = vpop.f32.mrb[20].mxu0 }
 0x4e3   :  { %v4325_v21 = vadd.f32 %v4324_v19, %v6622_v41  ;;  %v4365_v22 = vpop.f32.mrb[20].mxu1  ;;  %v4326_v32 = vpop.f32.mrb[21].mxu0 }
 0x4e4   :  { %v4327_v8 = vadd.f32 %v4326_v32, %v6628_v28  ;;  %v4367_v37 = vpop.f32.mrb[21].mxu1  ;;  %v4328_v40 = vpop.f32.mrb[22].mxu0 }
 0x4e5   :  { %v4366_v15 = vadd.f32 %v4365_v22, %v4325_v21  ;;  %v4369_v53 = vpop.f32.mrb[22].mxu1  ;;  %v4329_v59 = vpop.f32.mrb[23].mxu0 }
 0x4e6   :  { %v4368_v54 = vadd.f32 %v4367_v37, %v4327_v8  ;;  %v4370_v43 = vpop.f32.mrb[23].mxu1 }
 0x4e7   :  { %v4650_v61 = vadd.f32 %v4623_v26, %v4366_v15 }
 0x4e8   :  { %v4651_v9 = vadd.f32 %v4627_v38, %v4368_v54 }
 0x4ea   :  { %v4662_v0 = vcombine.low %v4650_v61, %v4651_v9 }
 0x4ec   :  { %4668 = vst [vmem:[#allocation10] sm:$0xff] %v4662_v0 }
 0x522   :  { %v4406_v44 = vpop.f32.mrb[24].mxu0 }
 0x523   :  { %v4407_v41 = vadd.f32 %v4406_v44, %v6602_v16  ;;  %v4447_v29 = vpop.f32.mrb[24].mxu1  ;;  %v4408_v31 = vpop.f32.mrb[25].mxu0 }
 0x524   :  { %v4409_v45 = vadd.f32 %v4408_v31, %v6604_v55  ;;  %v4449_v28 = vpop.f32.mrb[25].mxu1  ;;  %v4410_v6 = vpop.f32.mrb[26].mxu0 }
 0x525   :  { %v4448_v46 = vadd.f32 %v4447_v29, %v4407_v41  ;;  %v4451_v47 = vpop.f32.mrb[26].mxu1  ;;  %v4411_v35 = vpop.f32.mrb[27].mxu0 }
 0x526   :  { %v4450_v10 = vadd.f32 %v4449_v28, %v4409_v45  ;;  %v4452_v3 = vpop.f32.mrb[27].mxu1 }
 0x562   :  { %v4488_v51 = vpop.f32.mrb[28].mxu0 }
 0x563   :  { %v4489_v52 = vadd.f32 %v4488_v51, %v4448_v46  ;;  %v4529_v16 = vpop.f32.mrb[28].mxu1  ;;  %v4490_v5 = vpop.f32.mrb[29].mxu0 }
 0x564   :  { %v4530_v56 = vadd.f32 %v4529_v16, %v6619_v24  ;;  %v4491_v55 = vadd.f32 %v4490_v5, %v4450_v10  ;;  %v4531_v23 = vpop.f32.mrb[29].mxu1  ;;  %v4492_v17 = vpop.f32.mrb[30].mxu0  ;;  %v4639_v24 = vrot.slane %v4618_v12, %v4638_v48 }
 0x565   :  { %v4652_v27 = vadd.f32 %v4631_v4, %v4489_v52  ;;  %v4532_v33 = vadd.f32 %v4531_v23, %v6625_v7  ;;  %v4533_v57 = vpop.f32.mrb[30].mxu1  ;;  %v4493_v58 = vpop.f32.mrb[31].mxu0 }
 0x566   :  { %v4653_v62 = vadd.f32 %v4635_v11, %v4491_v55  ;;  %v4534_v60 = vpop.f32.mrb[31].mxu1 }
 0x568   :  { %v4663_v25 = vcombine.low %v4652_v27, %v4653_v62 }
 0x56a   :  { %4669 = vst [vmem:[#allocation10 + $0x8] sm:$0xff] %v4663_v25 }
 0x5a2   :  { %v4570_v1 = vpop.f32.mrb[32].mxu0 }
 0x5a3   :  { %v4571_v49 = vadd.f32 %v4570_v1, %v4530_v56  ;;  %v4611_v2 = vpop.f32.mrb[32].mxu1  ;;  %v4572_v13 = vpop.f32.mrb[33].mxu0 }
 0x5a4   :  { %v4573_v42 = vadd.f32 %v4572_v13, %v4532_v33  ;;  %v4613_v14 = vpop.f32.mrb[33].mxu1  ;;  %v4574_v18 = vpop.f32.mrb[34].mxu0 }
 0x5a5   :  { %v4612_v7 = vadd.f32 %v4611_v2, %v4571_v49  ;;  %v4615_v30 = vpop.f32.mrb[34].mxu1  ;;  %v4575_v39 = vpop.f32.mrb[35].mxu0 }
 0x5a6   :  { %v4614_v19 = vadd.f32 %v4613_v14, %v4573_v42  ;;  %v4616_v21 = vpop.f32.mrb[35].mxu1 }
 0x5a7   :  { %v4654_v22 = vadd.f32 %v4639_v24, %v4612_v7 }
 0x5a8   :  { %v4655_v26 = vadd.f32 %v4643_v34, %v4614_v19 }
 0x5aa   :  { %v4664_v32 = vcombine.low %v4654_v22, %v4655_v26 }
 0x5ac   :  { %4670 = vst [vmem:[#allocation10 + $0x10] sm:$0xff] %v4664_v32 }
 0x5ad   :  { %6256 = shalt.err (!%p6253_p8)
}
 0x5ae   :  { %s6257_s15 = scalar_lea.hbm %s6660_s4, 384 }
 0x5af   :  { %p6258_p9 = scmp.ne.s32.totalorder %s6660_s4, %s6257_s15  ;;  %p6261_p10 = scmp.lt.u32.totalorder %s6257_s15, %s6660_s4 }
 0x5b1   :  { %p6263_p11 = pnand %p6261_p10, %p6258_p9 }
 0x5b3   :  { %6266 = shalt.err (!%p6263_p11)
}
 0x5b4   :  { %4680 = dma.vmem_to_hbm [thread:$0]  %s4678_s26, 384, %s6660_s4, [#allocation4]  }
 0x5b5   :  { %6273 = dma.done.wait [#allocation4], 384  }
 0x5b6   :  { %6274 = vsyncadd [#allocation4], 4294966912 }
 0x5b7   :  { %4684 = vsyncpa [#allocation3], 1 }
 0x5b8   :  { %4685 = vsyncpa [#allocation6], 1 }
 0x5b9   :  { %4686 = vsyncpa [#allocation9], 1 }
 0x5ba   :  { %4687 = vsyncpa [#allocation4], 1 }

</bundles_post_ra>
